<compile_context>
chip_gen: v6e
topology: v6e:2x2x1
jax: 0.10.0
libtpu: 0.0.40
codegen_flags: <defaults>
</compile_context>

<pallas_src>
import numpy as np
import jax
import jax.numpy as jnp
from jax.experimental import pallas as pl
from jax.experimental.pallas import tpu as pltpu

FC_SIZES = (45, 45)

# Rows per grid step.  With TN=256 the lane-padded f32 intermediates
# ([TN*P, 45/90]-shaped h1 / h2 / dot outputs) peak around ~10 MiB, well under
# the scoped-VMEM limit on v5e/v6e/v7x, while compute per tile is large enough
# that the ~0.35 us per-step grid overhead is negligible.
TILE_N_MAX = 256


def _round_up(x, m):
    return ((x + m - 1) // m) * m


def _pvz_kernel(x_ref, l1_ref, w2v2_ref, b2_ref, wh_ref, bias_ref,
                pi_ref, val_ref):
    x = x_ref[...]                                     # [TN, P] f32
    tn, p = x.shape
    inv_p = jnp.float32(1.0 / p)

    # ----- equivariant layer 1 (C_in = 1): pure VPU broadcast, no matmul -----
    l1 = l1_ref[...]                                   # [3, C1] = [w1; v1; b1]
    w1 = l1[0][None, None, :]
    v1 = l1[1][None, None, :]
    b1 = l1[2][None, None, :]
    xbar = jnp.sum(x, axis=1, keepdims=True) * inv_p   # [TN, 1]
    h1 = jnp.maximum(x[:, :, None] * w1 + xbar[:, :, None] * v1 + b1, 0.0)
    c1 = h1.shape[-1]                                  # h1: [TN, P, C1]

    # ----- equivariant layer 2 (C1 -> C2), fused [W2 | V2] dot -----
    # yh2[:, :C2]  = h1 @ W2   (per-position term)
    # yh2[:, C2:]  = h1 @ V2 ; mean_p of it == mean_p(h1) @ V2 (invariant term)
    w2v2 = w2v2_ref[...]                               # [C1, 2*C2]
    c2 = w2v2.shape[-1] // 2
    yh2 = jnp.dot(h1.reshape(tn * p, c1), w2v2,
                  preferred_element_type=jnp.float32)  # [TN*P, 2*C2]
    s2 = jnp.sum(yh2.reshape(tn, p, 2 * c2), axis=1) * inv_p   # [TN, 2*C2]
    bb = s2[:, c2:]                                    # [TN, C2] invariant part
    a = yh2[:, :c2].reshape(tn, p, c2)                 # [TN, P, C2]
    h2 = jnp.maximum(a + bb[:, None, :] + b2_ref[...][None], 0.0)

    # ----- fused heads: single dot against [wp | vp | wv]  ([C2, 3]) -----
    yh = jnp.dot(h2.reshape(tn * p, c2), wh_ref[...],
                 preferred_element_type=jnp.float32)   # [TN*P, 3]
    # mean_p(h2) @ W == mean_p(h2 @ W): recover the invariant parts from the
    # same dot output (column 1 -> pi offset, column 2 -> value).
    bar = jnp.sum(yh.reshape(tn, p, 3), axis=1) * inv_p            # [TN, 3]

    bp = bias_ref[0]                                   # SMEM scalars
    bv = bias_ref[1]

    # pi head: per-position term + invariant term, softmax over positions.
    logits = yh[:, 0:1].reshape(tn, p) + bar[:, 1:2] + bp          # [TN, P]
    m = jnp.max(logits, axis=-1, keepdims=True)
    e = jnp.exp(logits - m)
    s = jnp.sum(e, axis=-1, keepdims=True)
    r = pl.reciprocal(s, approx=True)                  # EUP, not a VALU divide
    r = r * (2.0 - s * r)                              # one Newton step -> ~f32 accuracy
    pi = e * r                                         # [TN, P]

    # value head: invariant term only.
    val = bar[:, 2:3] + bv                             # [TN, 1]

    # Lane-dense stores: blocks are (8, TN*P/8) and (8, TN/8).
    pi_ref[...] = pi.reshape(pi_ref.shape)
    val_ref[...] = val.reshape(val_ref.shape)


def init_params(key, fc_sizes=FC_SIZES):
    c1, c2 = fc_sizes
    ks = jax.random.split(key, 11)

    def lin(k, fan_in, shape):
        return (jax.random.normal(k, shape, jnp.float32)
                / jnp.sqrt(jnp.float32(fan_in)))

    w1 = lin(ks[0], 1, (1, c1))
    v1 = lin(ks[1], 1, (1, c1))
    b1 = 0.1 * lin(ks[7], 1, (1, c1))
    w2 = lin(ks[2], c1, (c1, c2))
    v2 = lin(ks[3], c1, (c1, c2))
    b2 = 0.1 * lin(ks[8], 1, (1, c2))
    wp = lin(ks[4], c2, (c2, 1))
    vp = lin(ks[5], c2, (c2, 1))
    bp = 0.1 * lin(ks[9], 1, (1, 1))
    wv = lin(ks[6], c2, (c2, 1))
    bv = 0.1 * lin(ks[10], 1, (1, 1))
    return (w1, v1, b1, w2, v2, b2, wp, vp, bp, wv, bv)


def _pack_params(params):
    (w1, v1, b1, w2, v2, b2, wp, vp, bp, wv, bv) = params
    l1 = jnp.concatenate([w1, v1, b1], axis=0)                  # [3, C1]
    w2v2 = jnp.concatenate([w2, v2], axis=1)                    # [C1, 2*C2]
    wh = jnp.concatenate([wp, vp, wv], axis=1)                  # [C2, 3]
    b_sc = jnp.stack([bp[0, 0], bv[0, 0]]).astype(jnp.float32)  # [2] SMEM
    return l1, w2v2, b2, wh, b_sc


def pvz_forward(params, in_state, prev_action=None, prev_reward=None):
    """Mirrors pvzBasisModel.forward: returns (pi, v) with restored lead dims."""
    del prev_action, prev_reward  # unused, as in the reference forward
    state = in_state.astype(jnp.float32)
    lead_shape = state.shape[:-1]
    p = state.shape[-1]
    n = int(np.prod(lead_shape)) if lead_shape else 1
    x = state.reshape(n, p)

    l1, w2v2, b2, wh, b_sc = _pack_params(params)
    c1 = l1.shape[1]
    c2 = w2v2.shape[1] // 2

    tn = min(TILE_N_MAX, _round_up(n, 8))
    num_tiles = -(-n // tn)
    n_pad = num_tiles * tn
    if n_pad != n:
        x = jnp.pad(x, ((0, n_pad - n), (0, 0)))

    flops = n_pad * (5 * p * c1                      # layer-1 VPU
                     + 2 * p * c1 * 2 * c2           # fused [W2|V2] dot
                     + 4 * p * c2                    # layer-2 add/relu + reduce
                     + 2 * p * c2 * 3                # fused heads dot
                     + 8 * p)                        # softmax / misc
    cost = pl.CostEstimate(
        flops=int(flops),
        transcendentals=int(n_pad * (p + 2)),
        bytes_accessed=int(4 * (2 * n_pad * p + n_pad
                                + 3 * c1 + 2 * c1 * c2 + 4 * c2 + 2)))

    pi_out, val_out = pl.pallas_call(
        _pvz_kernel,
        out_shape=(jax.ShapeDtypeStruct((num_tiles * 8, tn * p // 8),
                                        jnp.float32),
                   jax.ShapeDtypeStruct((num_tiles * 8, tn // 8),
                                        jnp.float32)),
        grid=(num_tiles,),
        in_specs=[
            pl.BlockSpec((tn, p), lambda i: (i, 0)),             # x tile
            pl.BlockSpec((3, c1), lambda i: (0, 0)),             # [w1; v1; b1]
            pl.BlockSpec((c1, 2 * c2), lambda i: (0, 0)),        # [W2 | V2]
            pl.BlockSpec((1, c2), lambda i: (0, 0)),             # b2
            pl.BlockSpec((c2, 3), lambda i: (0, 0)),             # [wp|vp|wv]
            pl.BlockSpec(memory_space=pltpu.MemorySpace.SMEM),   # [bp, bv]
        ],
        out_specs=(
            pl.BlockSpec((8, tn * p // 8), lambda i: (i, 0)),    # pi (dense)
            pl.BlockSpec((8, tn // 8), lambda i: (i, 0)),        # value
        ),
        compiler_params=pltpu.CompilerParams(
            dimension_semantics=("parallel",),
            vmem_limit_bytes=32 * 1024 * 1024),
        cost_estimate=cost,
    )(x, l1, w2v2, b2, wh, b_sc)

    pi = pi_out.reshape(n_pad, p)[:n].reshape(*lead_shape, p)
    v = val_out.reshape(n_pad)[:n].reshape(lead_shape)
    return pi, v


def _reference_forward(params, in_state):
    """Pure-JAX reference of the same math, for a sanity check."""
    (w1, v1, b1, w2, v2, b2, wp, vp, bp, wv, bv) = params
    state = in_state.astype(jnp.float32)
    lead_shape = state.shape[:-1]
    p = state.shape[-1]
    x = state.reshape(-1, p)
    xbar = jnp.mean(x, axis=1, keepdims=True)
    h1 = jax.nn.relu(x[:, :, None] * w1[0] + xbar[:, :, None] * v1[0] + b1[0])
    h1bar = jnp.mean(h1, axis=1)
    h2 = jax.nn.relu(jnp.einsum('npc,cd->npd', h1, w2)
                     + (h1bar @ v2)[:, None, :] + b2[0])
    h2bar = jnp.mean(h2, axis=1)
    logits = (jnp.einsum('npc,cd->npd', h2, wp)[..., 0]
              + (h2bar @ vp) + bp[0, 0])
    pi = jax.nn.softmax(logits, axis=-1)
    v = h2bar @ wv + bv[0, 0]
    return pi.reshape(*lead_shape, p), v.reshape(lead_shape)


if __name__ == "__main__":
    key = jax.random.PRNGKey(0)
    k_param, k_state, k_state2, k_act, k_rew = jax.random.split(key, 5)

    params = init_params(k_param)
    P = 16

    # Small test: [T, B, P] leading dims restored.
    T, B = 2, 3
    in_state = jax.random.uniform(k_state, (T, B, P), jnp.float32)
    prev_action = jax.random.randint(k_act, (T, B), 0, P)
    prev_reward = jax.random.normal(k_rew, (T, B), jnp.float32)

    pi, v = pvz_forward(params, in_state, prev_action, prev_reward)
    jax.block_until_ready((pi, v))
    pi_ref, v_ref = _reference_forward(params, in_state)
    assert pi.shape == (T, B, P) and v.shape == (T, B)
    np.testing.assert_allclose(np.asarray(pi), np.asarray(pi_ref),
                               rtol=1e-4, atol=1e-5)
    np.testing.assert_allclose(np.asarray(v), np.asarray(v_ref),
                               rtol=1e-4, atol=1e-5)

    # Multi-tile test: exercises the grid, resident weights and row padding
    # (N=550 -> 3 grid steps of 256 rows, last block padded).
    B2 = 550
    in_state2 = jax.random.uniform(k_state2, (B2, P), jnp.float32)
    pi2, v2 = pvz_forward(params, in_state2)
    jax.block_until_ready((pi2, v2))
    pi2_ref, v2_ref = _reference_forward(params, in_state2)
    assert pi2.shape == (B2, P) and v2.shape == (B2,)
    np.testing.assert_allclose(np.asarray(pi2), np.asarray(pi2_ref),
                               rtol=1e-4, atol=1e-5)
    np.testing.assert_allclose(np.asarray(v2), np.asarray(v2_ref),
                               rtol=1e-4, atol=1e-5)

    print("KERNEL_OK")
</pallas_src>

<mosaic_0001>
module attributes {stable_mosaic.version = 11 : i64} {
  func.func @_pvz_kernel(%arg0: i32, %arg1: memref<8x16xf32, #tpu.memory_space<vmem>>, %arg2: memref<3x45xf32, #tpu.memory_space<vmem>>, %arg3: memref<45x90xf32, #tpu.memory_space<vmem>>, %arg4: memref<1x45xf32, #tpu.memory_space<vmem>>, %arg5: memref<45x3xf32, #tpu.memory_space<vmem>>, %arg6: memref<2xf32, #tpu.memory_space<smem>>, %arg7: memref<8x16xf32, #tpu.memory_space<vmem>>, %arg8: memref<8x1xf32, #tpu.memory_space<vmem>>) attributes {dimension_semantics = [#tpu.dimension_semantics<parallel>], iteration_bounds = array<i64: 1>, scalar_prefetch = 0 : i64, scratch_operands = 0 : i64, tpu.core_type = #tpu.core_type<tc>, window_params = [{transform_indices = @transform_0, window_bounds = array<i64: 8, 16>}, {pipeline_mode = #tpu.pipeline_mode<synchronous>, transform_indices = @transform_1, window_bounds = array<i64: 3, 45>}, {pipeline_mode = #tpu.pipeline_mode<synchronous>, transform_indices = @transform_2, window_bounds = array<i64: 45, 90>}, {pipeline_mode = #tpu.pipeline_mode<synchronous>, transform_indices = @transform_3, window_bounds = array<i64: 1, 45>}, {pipeline_mode = #tpu.pipeline_mode<synchronous>, transform_indices = @transform_4, window_bounds = array<i64: 45, 3>}, {transform_indices = @transform_5, window_bounds = array<i64: 2>}, {transform_indices = @transform_6, window_bounds = array<i64: 8, 16>}, {transform_indices = @transform_7, window_bounds = array<i64: 8, 1>}]} {
    %c0 = arith.constant 0 : index
    %c0_0 = arith.constant 0 : index
    %0 = vector.load %arg1[%c0, %c0_0] : memref<8x16xf32, #tpu.memory_space<vmem>>, vector<8x16xf32>
    %c0_1 = arith.constant 0 : index
    %c0_2 = arith.constant 0 : index
    %1 = vector.load %arg2[%c0_1, %c0_2] : memref<3x45xf32, #tpu.memory_space<vmem>>, vector<3x45xf32>
    %2 = vector.extract_strided_slice %1 {offsets = [0, 0], sizes = [1, 45], strides = [1, 1]} : vector<3x45xf32> to vector<1x45xf32>
    %3 = vector.shape_cast %2 : vector<1x45xf32> to vector<45xf32>
    %4 = vector.shape_cast %3 : vector<45xf32> to vector<1x1x45xf32>
    %5 = vector.extract_strided_slice %1 {offsets = [1, 0], sizes = [1, 45], strides = [1, 1]} : vector<3x45xf32> to vector<1x45xf32>
    %6 = vector.shape_cast %5 : vector<1x45xf32> to vector<45xf32>
    %7 = vector.shape_cast %6 : vector<45xf32> to vector<1x1x45xf32>
    %8 = vector.extract_strided_slice %1 {offsets = [2, 0], sizes = [1, 45], strides = [1, 1]} : vector<3x45xf32> to vector<1x45xf32>
    %9 = vector.shape_cast %8 : vector<1x45xf32> to vector<45xf32>
    %10 = vector.shape_cast %9 : vector<45xf32> to vector<1x1x45xf32>
    %cst = arith.constant dense<0.000000e+00> : vector<8xf32>
    %11 = vector.multi_reduction <add>, %0, %cst [1] : vector<8x16xf32> to vector<8xf32>
    %12 = vector.shape_cast %11 : vector<8xf32> to vector<8x1xf32>
    %cst_3 = arith.constant 6.250000e-02 : f32
    %13 = vector.broadcast %cst_3 : f32 to vector<8x1xf32>
    %14 = arith.mulf %12, %13 : vector<8x1xf32>
    %15 = vector.shape_cast %0 : vector<8x16xf32> to vector<8x16x1xf32>
    %16 = vector.broadcast %15 : vector<8x16x1xf32> to vector<8x16x45xf32>
    %17 = vector.broadcast %4 : vector<1x1x45xf32> to vector<8x16x45xf32>
    %18 = arith.mulf %16, %17 : vector<8x16x45xf32>
    %19 = vector.shape_cast %14 : vector<8x1xf32> to vector<8x1x1xf32>
    %20 = vector.broadcast %19 : vector<8x1x1xf32> to vector<8x1x45xf32>
    %21 = vector.broadcast %7 : vector<1x1x45xf32> to vector<8x1x45xf32>
    %22 = arith.mulf %20, %21 : vector<8x1x45xf32>
    %23 = vector.broadcast %22 : vector<8x1x45xf32> to vector<8x16x45xf32>
    %24 = arith.addf %18, %23 : vector<8x16x45xf32>
    %25 = vector.broadcast %10 : vector<1x1x45xf32> to vector<8x16x45xf32>
    %26 = arith.addf %24, %25 : vector<8x16x45xf32>
    %cst_4 = arith.constant 0.000000e+00 : f32
    %27 = vector.broadcast %cst_4 : f32 to vector<8x16x45xf32>
    %28 = arith.maximumf %26, %27 : vector<8x16x45xf32>
    %c0_5 = arith.constant 0 : index
    %c0_6 = arith.constant 0 : index
    %29 = vector.load %arg3[%c0_5, %c0_6] : memref<45x90xf32, #tpu.memory_space<vmem>>, vector<45x90xf32>
    %30 = vector.shape_cast %28 : vector<8x16x45xf32> to vector<128x45xf32>
    %cst_7 = arith.constant dense<0.000000e+00> : vector<128x90xf32>
    %31 = tpu.matmul %30, %29, %cst_7 {dimension_numbers = #tpu.dot_dimension_numbers<[1], [0], [0], [1], [0, 0, 1, 1], [], []>} : vector<128x45xf32>, vector<45x90xf32>, vector<128x90xf32> -> vector<128x90xf32>
    %32 = vector.shape_cast %31 : vector<128x90xf32> to vector<8x16x90xf32>
    %cst_8 = arith.constant dense<0.000000e+00> : vector<8x90xf32>
    %33 = vector.multi_reduction <add>, %32, %cst_8 [1] : vector<8x16x90xf32> to vector<8x90xf32>
    %cst_9 = arith.constant 6.250000e-02 : f32
    %34 = vector.broadcast %cst_9 : f32 to vector<8x90xf32>
    %35 = arith.mulf %33, %34 : vector<8x90xf32>
    %36 = vector.extract_strided_slice %35 {offsets = [0, 45], sizes = [8, 45], strides = [1, 1]} : vector<8x90xf32> to vector<8x45xf32>
    %37 = vector.extract_strided_slice %31 {offsets = [0, 0], sizes = [128, 45], strides = [1, 1]} : vector<128x90xf32> to vector<128x45xf32>
    %38 = vector.shape_cast %37 : vector<128x45xf32> to vector<8x16x45xf32>
    %39 = vector.shape_cast %36 : vector<8x45xf32> to vector<8x1x45xf32>
    %40 = vector.broadcast %39 : vector<8x1x45xf32> to vector<8x16x45xf32>
    %41 = arith.addf %38, %40 : vector<8x16x45xf32>
    %c0_10 = arith.constant 0 : index
    %c0_11 = arith.constant 0 : index
    %42 = vector.load %arg4[%c0_10, %c0_11] : memref<1x45xf32, #tpu.memory_space<vmem>>, vector<1x45xf32>
    %43 = vector.shape_cast %42 : vector<1x45xf32> to vector<1x1x45xf32>
    %44 = vector.broadcast %43 : vector<1x1x45xf32> to vector<8x16x45xf32>
    %45 = arith.addf %41, %44 : vector<8x16x45xf32>
    %cst_12 = arith.constant 0.000000e+00 : f32
    %46 = vector.broadcast %cst_12 : f32 to vector<8x16x45xf32>
    %47 = arith.maximumf %45, %46 : vector<8x16x45xf32>
    %48 = vector.shape_cast %47 : vector<8x16x45xf32> to vector<128x45xf32>
    %c0_13 = arith.constant 0 : index
    %c0_14 = arith.constant 0 : index
    %49 = vector.load %arg5[%c0_13, %c0_14] : memref<45x3xf32, #tpu.memory_space<vmem>>, vector<45x3xf32>
    %cst_15 = arith.constant dense<0.000000e+00> : vector<128x3xf32>
    %50 = tpu.matmul %48, %49, %cst_15 {dimension_numbers = #tpu.dot_dimension_numbers<[1], [0], [0], [1], [0, 0, 1, 1], [], []>} : vector<128x45xf32>, vector<45x3xf32>, vector<128x3xf32> -> vector<128x3xf32>
    %51 = vector.shape_cast %50 : vector<128x3xf32> to vector<8x16x3xf32>
    %cst_16 = arith.constant dense<0.000000e+00> : vector<8x3xf32>
    %52 = vector.multi_reduction <add>, %51, %cst_16 [1] : vector<8x16x3xf32> to vector<8x3xf32>
    %cst_17 = arith.constant 6.250000e-02 : f32
    %53 = vector.broadcast %cst_17 : f32 to vector<8x3xf32>
    %54 = arith.mulf %52, %53 : vector<8x3xf32>
    %c0_18 = arith.constant 0 : index
    %55 = memref.load %arg6[%c0_18] : memref<2xf32, #tpu.memory_space<smem>>
    %c1 = arith.constant 1 : index
    %56 = memref.load %arg6[%c1] : memref<2xf32, #tpu.memory_space<smem>>
    %57 = vector.extract_strided_slice %50 {offsets = [0, 0], sizes = [128, 1], strides = [1, 1]} : vector<128x3xf32> to vector<128x1xf32>
    %58 = vector.shape_cast %57 : vector<128x1xf32> to vector<8x16xf32>
    %59 = vector.extract_strided_slice %54 {offsets = [0, 1], sizes = [8, 1], strides = [1, 1]} : vector<8x3xf32> to vector<8x1xf32>
    %60 = vector.broadcast %59 : vector<8x1xf32> to vector<8x16xf32>
    %61 = arith.addf %58, %60 : vector<8x16xf32>
    %62 = vector.broadcast %55 : f32 to vector<8x16xf32>
    %63 = arith.addf %61, %62 : vector<8x16xf32>
    %cst_19 = arith.constant dense<0xFF800000> : vector<8xf32>
    %64 = vector.multi_reduction <maximumf>, %63, %cst_19 [1] : vector<8x16xf32> to vector<8xf32>
    %65 = vector.shape_cast %64 : vector<8xf32> to vector<8x1xf32>
    %66 = vector.broadcast %65 : vector<8x1xf32> to vector<8x16xf32>
    %67 = arith.subf %63, %66 : vector<8x16xf32>
    %68 = math.exp %67 : vector<8x16xf32>
    %cst_20 = arith.constant dense<0.000000e+00> : vector<8xf32>
    %69 = vector.multi_reduction <add>, %68, %cst_20 [1] : vector<8x16xf32> to vector<8xf32>
    %70 = vector.shape_cast %69 : vector<8xf32> to vector<8x1xf32>
    %71 = tpu.reciprocal %70 {approx = true} : vector<8x1xf32> -> vector<8x1xf32>
    %72 = arith.mulf %70, %71 : vector<8x1xf32>
    %cst_21 = arith.constant 2.000000e+00 : f32
    %73 = vector.broadcast %cst_21 : f32 to vector<8x1xf32>
    %74 = arith.subf %73, %72 : vector<8x1xf32>
    %75 = arith.mulf %71, %74 : vector<8x1xf32>
    %76 = vector.broadcast %75 : vector<8x1xf32> to vector<8x16xf32>
    %77 = arith.mulf %68, %76 : vector<8x16xf32>
    %78 = vector.extract_strided_slice %54 {offsets = [0, 2], sizes = [8, 1], strides = [1, 1]} : vector<8x3xf32> to vector<8x1xf32>
    %79 = vector.broadcast %56 : f32 to vector<8x1xf32>
    %80 = arith.addf %78, %79 : vector<8x1xf32>
    %c0_22 = arith.constant 0 : index
    %c0_23 = arith.constant 0 : index
    %81 = vector.load %arg7[%c0_22, %c0_23] : memref<8x16xf32, #tpu.memory_space<vmem>>, vector<8x16xf32>
    tpu.vector_store %arg7[%c0_22, %c0_23], %77 {strides = array<i32>} : memref<8x16xf32, #tpu.memory_space<vmem>>, vector<8x16xf32>,
    %c0_24 = arith.constant 0 : index
    %c0_25 = arith.constant 0 : index
    %82 = vector.load %arg8[%c0_24, %c0_25] : memref<8x1xf32, #tpu.memory_space<vmem>>, vector<8x1xf32>
    tpu.vector_store %arg8[%c0_24, %c0_25], %80 {strides = array<i32>} : memref<8x1xf32, #tpu.memory_space<vmem>>, vector<8x1xf32>,
    return
  }
  func.func @transform_0(%arg0: i32) -> (i32, i32) {
    %c0_i32 = arith.constant 0 : i32
    %c0_i32_0 = arith.constant 0 : i32
    return %arg0, %c0_i32 : i32, i32
  }
  func.func @transform_1(%arg0: i32) -> (i32, i32) {
    %c0_i32 = arith.constant 0 : i32
    %c0_i32_0 = arith.constant 0 : i32
    %c0_i32_1 = arith.constant 0 : i32
    return %c0_i32, %c0_i32_0 : i32, i32
  }
  func.func @transform_2(%arg0: i32) -> (i32, i32) {
    %c0_i32 = arith.constant 0 : i32
    %c0_i32_0 = arith.constant 0 : i32
    %c0_i32_1 = arith.constant 0 : i32
    return %c0_i32, %c0_i32_0 : i32, i32
  }
  func.func @transform_3(%arg0: i32) -> (i32, i32) {
    %c0_i32 = arith.constant 0 : i32
    %c0_i32_0 = arith.constant 0 : i32
    %c0_i32_1 = arith.constant 0 : i32
    return %c0_i32, %c0_i32_0 : i32, i32
  }
  func.func @transform_4(%arg0: i32) -> (i32, i32) {
    %c0_i32 = arith.constant 0 : i32
    %c0_i32_0 = arith.constant 0 : i32
    %c0_i32_1 = arith.constant 0 : i32
    return %c0_i32, %c0_i32_0 : i32, i32
  }
  func.func @transform_5(%arg0: i32) -> i32 {
    %c0_i32 = arith.constant 0 : i32
    %c0_i32_0 = arith.constant 0 : i32
    return %c0_i32 : i32
  }
  func.func @transform_6(%arg0: i32) -> (i32, i32) {
    %c0_i32 = arith.constant 0 : i32
    %c0_i32_0 = arith.constant 0 : i32
    return %arg0, %c0_i32 : i32, i32
  }
  func.func @transform_7(%arg0: i32) -> (i32, i32) {
    %c0_i32 = arith.constant 0 : i32
    %c0_i32_0 = arith.constant 0 : i32
    return %arg0, %c0_i32 : i32, i32
  }
}

</mosaic_0001>

<bundles_post_ra>
// kernel: tpu_custom_call.1
= control target key start
LH: loop header
LB: loop body
LE: loop exit
PB: predicated region body
PF: predicated region fallthrough
CT: control target
= control target key end

     0   :  { %13 = vsyncpa [#allocation3], 0  ;;  %s2625_s0 = inlined_call_operand.hbm [shape: f32[8,16], index: 0, kind: input, shape index: {}]   ;;  %s2626_s1 = inlined_call_operand.vmem [shape: f32[3,45], index: 1, kind: input, shape index: {}]   ;;  %s2627_s2 = inlined_call_operand.vmem [shape: f32[45,90], index: 2, kind: input, shape index: {}]   ;;  %s2628_s3 = inlined_call_operand.vmem [shape: f32[1,45], index: 3, kind: input, shape index: {}]   ;;  %s2629_s4 = inlined_call_operand.vmem [shape: f32[45,3], index: 4, kind: input, shape index: {}]   ;;  %s2630_s5 = inlined_call_operand.vmem [shape: f32[2], index: 5, kind: input, shape index: {}]   ;;  %s2631_s6 = inlined_call_operand.hbm [shape: f32[8,16], index: 6, kind: output, shape index: {0}]   ;;  %s2632_s7 = inlined_call_operand.vmem [shape: f32[8,1], index: 7, kind: output, shape index: {1}]  }
   0x1   :  { %14 = vsyncpa [#allocation5], 0 }
   0x2   :  { %15 = vsyncpa [#allocation4], 0  ;;  %s40_s26 = sshll.u32 %s2630_s5, 4  ;;  %s1933_s27 = smov [#allocation2]   ;;  %s41_s26 = int_to_ptr.vmem [resolvable:$true] %s40_s26 }
   0x3   :  { %s22_s28 = sshll.u32 %s1933_s27, 4  ;;  %s23_s28 = int_to_ptr.vmem [resolvable:$true] %s22_s28 }
   0x4   :  { %s1883_s29 = scalar_lea.vmem %s23_s28, 128  ;;  %p1888_p1 = scmp.lt.s32.totalorder %s23_s28, %s23_s28 }
   0x5   :  { %p1884_p0 = scmp.ne.s32.totalorder %s23_s28, %s1883_s29  ;;  %p1889_p2 = scmp.lt.s32.totalorder %s1883_s29, %s1883_s29 }
   0x7   :  { %p1890_p3 = por %p1889_p2, %p1888_p1 }
   0x9   :  { %p1891_p4 = pnand %p1890_p3, %p1884_p0 }
   0xb   :  { %1894 = shalt.err (!%p1891_p4)
}
   0xc   :  { %25 = dma.hbm_to_vmem [thread:$0]  %s2625_s0, 128, %s23_s28, [#allocation3]  }
   0xd   :  { %s1895_s9 = scalar_lea.vmem %s41_s26, 16  ;;  %p1900_p6 = scmp.lt.s32.totalorder %s41_s26, %s41_s26 }
   0xe   :  { %p1896_p5 = scmp.ne.s32.totalorder %s41_s26, %s1895_s9  ;;  %p1901_p7 = scmp.lt.s32.totalorder %s1895_s9, %s1895_s9 }
  0x10   :  { %p1902_p8 = por %p1901_p7, %p1900_p6 }
  0x12   :  { %p1903_p9 = pnand %p1902_p8, %p1896_p5 }
  0x14   :  { %1906 = shalt.err (!%p1903_p9)
}
  0x15   :  { %s1934_s5 = smov [#allocation6]  }
  0x16   :  { %43 = dma.vmem_to_smem %s41_s26, 16, %s1934_s5, [#allocation5]  }
  0x17   :  { %1927 = dma.done.wait [#allocation3], 128  }
  0x18   :  { %1928 = vsyncadd [#allocation3], 4294967168 }
  0x19   :  { %1929 = dma.done.wait [#allocation5], 16  }
  0x1a   :  { %1930 = vsyncadd [#allocation5], 4294967280 }
  0x1b   :  { %50 = sfence }
  0x1c   :  { %v51_v0 = vld [vmem:[#allocation2] sm:$0xff]  ;;  %vm53_vm0 = vcmask 130048   ;;  %v58_v1 = vlaneseq  ;;  %v304_v13 = vld [vmem:[%s2627_s2 + $0x28] sm:$0x1f]  ;;  %vm354_vm1 = vcmask 1044480   ;;  %v302_v16 = vld [vmem:[%s2627_s2 + $0x18] sm:$0xff] }
  0x1d   :  { %v54_v2 = vsel %vm53_vm0, %v51_v0, 0.0  ;;  %1758 = vmatprep.subr.msk.mxu0 %vm354_vm1, %v304_v13  ;;  %v303_v15 = vld [vmem:[%s2627_s2 + $0x20] sm:$0xff]  ;;  %v301_v19 = vld [vmem:[%s2627_s2 + $0x10] sm:$0xff]  ;;  %v300_v20 = vld [vmem:[%s2627_s2 + $0x8] sm:$0xff]  ;;  %vm305_vm2 = vcmask 367616   ;;  %vm503_vm3 = vcmask 736256  }
  0x1e   :  { %55 = vadd.xlane.f32.xlu0 %v54_v2  ;;  %v59_v3 = vshrl.u32 %v58_v1, 7  ;;  %v1094_v4 = vand.u32 127, %v58_v1  ;;  %1759 = vmatpush3.msk.msra.mxu0 %vm354_vm1, %v304_v13  ;;  %v299_v24 = vld [vmem:[%s2627_s2] sm:$0xff]  ;;  %vm873_vm4 = vcmask 23552   ;;  %vm1169_vm5 = vcmask 1041409   ;;  %s954_s10 = sld [smem:[#allocation6]] }
  0x1f   :  { %1760 = vmatprep.subr.mxu0 %v303_v15  ;;  %v2038_v35 = vld [vmem:[%s2626_s1] sm:$0x7]  ;;  %vm1171_vm6 = vcmask 1042434   ;;  %vm1173_vm7 = vcmask 1043459   ;;  %vm1175_vm8 = vcmask 1044484   ;;  %vm1177_vm9 = vcmask 1045509  }
  0x20   :  { %v1987_v5 = vsub.s32 0, %v59_v3  ;;  %v1989_v6 = vsub.s32 %v1094_v4, %v59_v3  ;;  %v1099_v7 = vadd.s32 4294967288, %v1094_v4  ;;  %v1991_v8 = vsub.s32 1, %v59_v3  ;;  %1761 = vmatpush3.msra.mxu0 %v303_v15  ;;  %s1938_s11 = smov 126  }
  0x21   :  { %v1997_v12 = vsub.s32 2, %v59_v3  ;;  %1762 = vmatprep.subr.mxu0 %v302_v16  ;;  %v2011_v17 = vsub.s32 3, %v59_v3  ;;  %v2013_v18 = vsub.s32 4, %v59_v3  ;;  %v2023_v23 = vsub.s32 5, %v59_v3 }
  0x22   :  { %v61_v9 = vrot.slane %v51_v0, %v1987_v5  ;;  %v1994_v10 = vsub.s32 %v1099_v7, %v59_v3  ;;  %v72_v11 = vrot.slane %v51_v0, %v1991_v8  ;;  %1763 = vmatpush3.msra.mxu0 %v302_v16  ;;  %v2029_v26 = vsub.s32 6, %v59_v3 }
  0x23   :  { %v83_v14 = vrot.slane %v51_v0, %v1997_v12  ;;  %1764 = vmatprep.subr.mxu0 %v301_v19  ;;  %v94_v21 = vrot.slane %v51_v0, %v2011_v17  ;;  %v105_v22 = vrot.slane %v51_v0, %v2013_v18  ;;  %v116_v25 = vrot.slane %v51_v0, %v2023_v23 }
  0x24   :  { %67 = vbcast.lane.b32.xlu1 %v61_v9, 264  ;;  %1765 = vmatpush3.msra.mxu0 %v301_v19  ;;  %v127_v27 = vrot.slane %v51_v0, %v2029_v26  ;;  %v2032_v28 = vsub.s32 7, %v59_v3  ;;  %v2044_v38 = vrot.slane %v2038_v35, %v1987_v5  ;;  %v2058_v48 = vrot.slane %v2038_v35, %v1997_v12 }
  0x25   :  { %1766 = vmatprep.subr.mxu0 %v300_v20  ;;  %vm1179_vm10 = vcmask 1046534   ;;  %vm1181_vm11 = vcmask 1047559   ;;  %vm1104_vm12 = vcmask 130112   ;;  %vm1656_vm13 = vcmask 7168  }
  0x26   :  { %1767 = vmatpush3.msra.mxu0 %v300_v20  ;;  %v138_v29 = vrot.slane %v51_v0, %v2032_v28 }
  0x27   :  { %1768 = vmatprep.subr.mxu0 %v299_v24 }
  0x28   :  { %74 = vbcast.lane.b32.xlu1 %v72_v11, 256  ;;  %1769 = vmatpush3.msra.mxu0 %v299_v24 }
  0x2c   :  { %78 = vbcast.lane.b32.xlu1 %v72_v11, 264 }
  0x30   :  { %85 = vbcast.lane.b32.xlu1 %v83_v14, 256 }
  0x34   :  { %89 = vbcast.lane.b32.xlu1 %v83_v14, 264  ;;  %63 = vbcast.lane.b32.xlu0 %v61_v9, 256 }
  0x38   :  { %96 = vbcast.lane.b32.xlu1 %v94_v21, 256  ;;  %107 = vbcast.lane.b32.xlu0 %v105_v22, 256 }
  0x3c   :  { %100 = vbcast.lane.b32.xlu1 %v94_v21, 264  ;;  %118 = vbcast.lane.b32.xlu0 %v116_v25, 256 }
  0x40   :  { %111 = vbcast.lane.b32.xlu1 %v105_v22, 264  ;;  %129 = vbcast.lane.b32.xlu0 %v127_v27, 256 }
  0x44   :  { %122 = vbcast.lane.b32.xlu1 %v116_v25, 264  ;;  %140 = vbcast.lane.b32.xlu0 %v138_v29, 256 }
  0x48   :  { %133 = vbcast.lane.b32.xlu1 %v127_v27, 264 }
  0x4c   :  { %144 = vbcast.lane.b32.xlu1 %v138_v29, 264 }
  0x96   :  { %v68_v30 = vpop.permute.xlu1 %67 }
  0x97   :  { %v151_v49 = vmul.f32 %v2044_v38, %v68_v30 }
  0x9a   :  { %v75_v31 = vpop.permute.xlu1 %74 }
  0x9b   :  { %v152_v52 = vmul.f32 %v2044_v38, %v75_v31 }
  0x9e   :  { %v79_v32 = vpop.permute.xlu1 %78 }
  0x9f   :  { %v153_v46 = vmul.f32 %v2044_v38, %v79_v32 }
  0xa2   :  { %v86_v33 = vpop.permute.xlu1 %85 }
  0xa3   :  { %v154_v7 = vmul.f32 %v2044_v38, %v86_v33 }
  0xa6   :  { %v90_v34 = vpop.permute.xlu1 %89 }
  0xa7   :  { %v56_v36 = vpop.xlane.xlu0 %55  ;;  %v155_v9 = vmul.f32 %v2044_v38, %v90_v34 }
  0xa8   :  { %v2040_v37 = vmul.f32 0.0625, %v56_v36 }
  0xaa   :  { %v97_v39 = vpop.permute.xlu1 %96  ;;  %v170_v40 = vrot.slane %v2040_v37, %v1987_v5  ;;  %v182_v41 = vrot.slane %v2040_v37, %v2011_v17  ;;  %v174_v43 = vrot.slane %v2040_v37, %v1991_v8  ;;  %v186_v60 = vrot.slane %v2040_v37, %v2013_v18 }
  0xab   :  { %v64_v42 = vpop.permute.xlu0 %63  ;;  %v178_v0 = vrot.slane %v2040_v37, %v1997_v12  ;;  %v156_v1 = vmul.f32 %v2044_v38, %v97_v39  ;;  %v190_v16 = vrot.slane %v2040_v37, %v2023_v23  ;;  %v194_v29 = vrot.slane %v2040_v37, %v2029_v26 }
  0xac   :  { %v207_v44 = vmul.f32 %v170_v40, %v2038_v35  ;;  %v150_v45 = vmul.f32 %v2044_v38, %v64_v42  ;;  %v208_v47 = vmul.f32 %v174_v43, %v2038_v35  ;;  %v210_v53 = vmul.f32 %v182_v41, %v2038_v35 }
  0xad   :  { %v211_v15 = vmul.f32 %v186_v60, %v2038_v35  ;;  %v209_v20 = vmul.f32 %v178_v0, %v2038_v35  ;;  %v212_v32 = vmul.f32 %v190_v16, %v2038_v35 }
  0xae   :  { %v218_v50 = vrot.slane %v207_v44, %v1991_v8  ;;  %v101_v51 = vpop.permute.xlu1 %100  ;;  %v222_v55 = vrot.slane %v208_v47, %v1991_v8  ;;  %v230_v2 = vrot.slane %v210_v53, %v1991_v8  ;;  %v213_v47 = vmul.f32 %v194_v29, %v2038_v35 }
  0xaf   :  { %v108_v54 = vpop.permute.xlu0 %107  ;;  %v157_v22 = vmul.f32 %v2044_v38, %v101_v51  ;;  %v226_v27 = vrot.slane %v209_v20, %v1991_v8  ;;  %v234_v31 = vrot.slane %v211_v15, %v1991_v8 }
  0xb0   :  { %v248_v56 = vadd.f32 %v218_v50, %v151_v49  ;;  %v247_v57 = vadd.f32 %v218_v50, %v150_v45  ;;  %v249_v58 = vadd.f32 %v222_v55, %v152_v52  ;;  %v250_v59 = vadd.f32 %v222_v55, %v153_v46 }
  0xb1   :  { %v253_v21 = vadd.f32 %v230_v2, %v156_v1  ;;  %v158_v24 = vmul.f32 %v2044_v38, %v108_v54  ;;  %v251_v33 = vadd.f32 %v226_v27, %v154_v7  ;;  %v252_v34 = vadd.f32 %v226_v27, %v155_v9 }
  0xb2   :  { %v112_v61 = vpop.permute.xlu1 %111  ;;  %v267_v62 = vadd.f32 %v2058_v48, %v247_v57  ;;  %v268_v63 = vadd.f32 %v2058_v48, %v248_v56  ;;  %v269_v3 = vadd.f32 %v2058_v48, %v249_v58  ;;  %v270_v14 = vadd.f32 %v2058_v48, %v250_v59 }
  0xb3   :  { %v119_v11 = vpop.permute.xlu0 %118  ;;  %v273_v36 = vadd.f32 %v2058_v48, %v253_v21  ;;  %v254_v39 = vadd.f32 %v230_v2, %v157_v22  ;;  %v159_v40 = vmul.f32 %v2044_v38, %v112_v61  ;;  %v255_v42 = vadd.f32 %v234_v31, %v158_v24 }
  0xb4   :  { %v283_v4 = vmax.f32 %v267_v62, 0.0  ;;  %v284_v13 = vmax.f32 %v268_v63, 0.0  ;;  %v285_v19 = vmax.f32 %v269_v3, 0.0  ;;  %v286_v30 = vmax.f32 %v270_v14, 0.0 }
  0xb5   :  { %v160_v43 = vmul.f32 %v2044_v38, %v119_v11  ;;  %v271_v44 = vadd.f32 %v2058_v48, %v251_v33  ;;  %v272_v45 = vadd.f32 %v2058_v48, %v252_v34  ;;  %v238_v46 = vrot.slane %v212_v32, %v1991_v8  ;;  %v676_v32 = vld [vmem:[%s2629_s4 + $0x28] sm:$0x1f]  ;;  %v675_v33 = vld [vmem:[%s2629_s4 + $0x20] sm:$0xff] }
  0xb6   :  { %1770 = vmatprep.mubr.msk.f32.mxu0 %vm305_vm2, %v283_v4  ;;  %v123_v25 = vpop.permute.xlu1 %122  ;;  %v198_v50 = vrot.slane %v2040_v37, %v2032_v28  ;;  %v274_v52 = vadd.f32 %v2058_v48, %v254_v39  ;;  %v256_v53 = vadd.f32 %v234_v31, %v159_v40  ;;  %v289_v56 = vmax.f32 %v273_v36, 0.0  ;;  %1794 = vmatprep.subr.msk.mxu1 %vm354_vm1, %v676_v32 }
  0xb7   :  { %1771 = vmatmul.mubr.msk.f32.vlgmr.msra.gmra.mxu0 %vm305_vm2, %v284_v13  ;;  %v130_v41 = vpop.permute.xlu0 %129  ;;  %v287_v51 = vmax.f32 %v271_v44, 0.0  ;;  %v161_v54 = vmul.f32 %v2044_v38, %v123_v25  ;;  %v288_v55 = vmax.f32 %v272_v45, 0.0  ;;  %v275_v57 = vadd.f32 %v2058_v48, %v255_v42  ;;  %1795 = vmatpush3.msk.msra.mxu1 %vm354_vm1, %v676_v32 }
  0xb8   :  { %1773 = vmatprep.mubr.msk.f32.mxu0 %vm305_vm2, %v285_v19  ;;  %v257_v58 = vadd.f32 %v238_v46, %v160_v43  ;;  %v162_v59 = vmul.f32 %v2044_v38, %v130_v41  ;;  %v242_v37 = vrot.slane %v213_v47, %v1991_v8  ;;  %v214_v61 = vmul.f32 %v198_v50, %v2038_v35 }
  0xb9   :  { %v290_v62 = vmax.f32 %v274_v52, 0.0  ;;  %v276_v63 = vadd.f32 %v2058_v48, %v256_v53  ;;  %v258_v0 = vadd.f32 %v238_v46, %v161_v54  ;;  %v291_v2 = vmax.f32 %v275_v57, 0.0  ;;  %1796 = vmatprep.subr.mxu1 %v675_v33  ;;  %v673_v53 = vld [vmem:[%s2629_s4 + $0x10] sm:$0xff]  ;;  %v672_v54 = vld [vmem:[%s2629_s4 + $0x8] sm:$0xff] }
  0xba   :  { %v134_v49 = vpop.permute.xlu1 %133  ;;  %v277_v3 = vadd.f32 %v2058_v48, %v257_v58  ;;  %v259_v4 = vadd.f32 %v242_v37, %v162_v59  ;;  %v246_v11 = vrot.slane %v214_v61, %v1991_v8  ;;  %1797 = vmatpush3.msra.mxu1 %v675_v33 }
  0xbb   :  { %1774 = vmatmul.mubr.msk.f32.gmra.mxu0 %vm305_vm2, %v286_v30  ;;  %v141_v60 = vpop.permute.xlu0 %140  ;;  %v163_v1 = vmul.f32 %v2044_v38, %v134_v49  ;;  %v292_v35 = vmax.f32 %v276_v63, 0.0  ;;  %v278_v13 = vadd.f32 %v2058_v48, %v258_v0  ;;  %v671_v63 = vld [vmem:[%s2629_s4] sm:$0xff] }
  0xbc   :  { %1776 = vmatprep.mubr.msk.f32.mxu0 %vm305_vm2, %v287_v51  ;;  %v164_v7 = vmul.f32 %v2044_v38, %v141_v60  ;;  %v293_v16 = vmax.f32 %v277_v3, 0.0  ;;  %v279_v19 = vadd.f32 %v2058_v48, %v259_v4 }
  0xbd   :  { %v260_v14 = vadd.f32 %v242_v37, %v163_v1  ;;  %v294_v21 = vmax.f32 %v278_v13, 0.0 }
  0xbe   :  { %v145_v9 = vpop.permute.xlu1 %144  ;;  %v261_v20 = vadd.f32 %v246_v11, %v164_v7  ;;  %v295_v25 = vmax.f32 %v279_v19, 0.0 }
  0xbf   :  { %1777 = vmatmul.mubr.msk.f32.gmra.mxu0 %vm305_vm2, %v288_v55  ;;  %v165_v15 = vmul.f32 %v2044_v38, %v145_v9  ;;  %v280_v22 = vadd.f32 %v2058_v48, %v260_v14 }
  0xc0   :  { %1779 = vmatprep.mubr.msk.f32.mxu0 %vm305_vm2, %v289_v56  ;;  %v281_v27 = vadd.f32 %v2058_v48, %v261_v20 }
  0xc1   :  { %v262_v24 = vadd.f32 %v246_v11, %v165_v15  ;;  %v296_v38 = vmax.f32 %v280_v22, 0.0 }
  0xc2   :  { %v297_v30 = vmax.f32 %v281_v27, 0.0 }
  0xc3   :  { %1780 = vmatmul.mubr.msk.f32.gmra.mxu0 %vm305_vm2, %v290_v62  ;;  %v282_v29 = vadd.f32 %v2058_v48, %v262_v24  ;;  %v674_v48 = vld [vmem:[%s2629_s4 + $0x18] sm:$0xff]  ;;  %s1935_s4 = smov 83  }
  0xc4   :  { %1782 = vmatprep.mubr.msk.f32.mxu0 %vm305_vm2, %v291_v2  ;;  %1798 = vmatprep.subr.mxu1 %v674_v48 }
  0xc5   :  { %v298_v31 = vmax.f32 %v282_v29, 0.0  ;;  %1799 = vmatpush3.msra.mxu1 %v674_v48 }
  0xc6   :  { %1800 = vmatprep.subr.mxu1 %v673_v53 }
  0xc7   :  { %1783 = vmatmul.mubr.msk.f32.gmra.mxu0 %vm305_vm2, %v292_v35  ;;  %1801 = vmatpush3.msra.mxu1 %v673_v53 }
  0xc8   :  { %1785 = vmatprep.mubr.msk.f32.mxu0 %vm305_vm2, %v293_v16  ;;  %1802 = vmatprep.subr.mxu1 %v672_v54 }
  0xc9   :  { %1803 = vmatpush3.msra.mxu1 %v672_v54 }
  0xca   :  { %1804 = vmatprep.subr.mxu1 %v671_v63 }
  0xcb   :  { %1786 = vmatmul.mubr.msk.f32.gmra.mxu0 %vm305_vm2, %v294_v21  ;;  %1805 = vmatpush3.msra.mxu1 %v671_v63 }
  0xcc   :  { %1788 = vmatprep.mubr.msk.f32.mxu0 %vm305_vm2, %v295_v25 }
  0xcf   :  { %1789 = vmatmul.mubr.msk.f32.gmra.mxu0 %vm305_vm2, %v296_v38 }
  0xd0   :  { %1791 = vmatprep.mubr.msk.f32.mxu0 %vm305_vm2, %v297_v30 }
  0xd3   :  { %1792 = vmatmul.mubr.msk.f32.gmra.mxu0 %vm305_vm2, %v298_v31 }
 0x177   :  { %v2141_v34 = vpop.f32.mrf.mxu0 }
 0x178   :  { %v505_v39 = vsel %vm503_vm3, %v2141_v34, 0.0 }
 0x179   :  { %v2143_v36 = vpop.f32.mrf.mxu0 }
 0x17a   :  { %v504_v40 = vsel %vm503_vm3, %v2143_v36, 0.0 }
 0x17b   :  { %v506_v41 = vadd.f32 %v505_v39, %v504_v40  ;;  %v2149_v42 = vpop.f32.mrf.mxu0 }
 0x17c   :  { %v514_v45 = vsel %vm503_vm3, %v2149_v42, 0.0 }
 0x17d   :  { %v507_v43 = vrot.slane %v506_v41, 4  ;;  %v2151_v44 = vpop.f32.mrf.mxu0 }
 0x17e   :  { %v513_v46 = vsel %vm503_vm3, %v2151_v44, 0.0 }
 0x17f   :  { %v508_v47 = vadd.f32 %v507_v43, %v506_v41  ;;  %v515_v49 = vadd.f32 %v514_v45, %v513_v46  ;;  %v2157_v52 = vpop.f32.mrf.mxu0 }
 0x180   :  { %v523_v58 = vsel %vm503_vm3, %v2157_v52, 0.0 }
 0x181   :  { %v509_v50 = vrot.slane %v508_v47, 2  ;;  %v516_v51 = vrot.slane %v515_v49, 4  ;;  %v2165_v56 = vpop.f32.mrf.mxu0 }
 0x182   :  { %v522_v59 = vsel %vm503_vm3, %v2165_v56, 0.0 }
 0x183   :  { %v517_v55 = vadd.f32 %v516_v51, %v515_v49  ;;  %v510_v57 = vadd.f32 %v509_v50, %v508_v47  ;;  %v524_v37 = vadd.f32 %v523_v58, %v522_v59  ;;  %v2171_v61 = vpop.f32.mrf.mxu0 }
 0x184   :  { %v532_v4 = vsel %vm503_vm3, %v2171_v61, 0.0 }
 0x185   :  { %v518_v60 = vrot.slane %v517_v55, 2  ;;  %v511_v62 = vrot.slane %v510_v57, 1  ;;  %v525_v0 = vrot.slane %v524_v37, 4  ;;  %v2176_v1 = vpop.f32.mrf.mxu0 }
 0x186   :  { %v531_v7 = vsel %vm503_vm3, %v2176_v1, 0.0 }
 0x187   :  { %v512_v2 = vadd.f32 %v511_v62, %v510_v57  ;;  %v519_v3 = vadd.f32 %v518_v60, %v517_v55  ;;  %v526_v9 = vadd.f32 %v525_v0, %v524_v37  ;;  %v533_v11 = vadd.f32 %v532_v4, %v531_v7  ;;  %v2182_v35 = vpop.f32.mrf.mxu0 }
 0x188   :  { %v541_v21 = vsel %vm503_vm3, %v2182_v35, 0.0 }
 0x189   :  { %v576_v13 = vmul.f32 0.0625, %v512_v2  ;;  %v520_v14 = vrot.slane %v519_v3, 1  ;;  %v527_v15 = vrot.slane %v526_v9, 2  ;;  %v534_v16 = vrot.slane %v533_v11, 4  ;;  %v2184_v19 = vpop.f32.mrf.mxu0 }
 0x18a   :  { %v540_v22 = vsel %vm503_vm3, %v2184_v19, 0.0 }
 0x18b   :  { %592 = vrot.lane.b32.xlu0 %v576_v13, %s1935_s4  ;;  %v521_v20 = vadd.f32 %v520_v14, %v519_v3  ;;  %v535_v24 = vadd.f32 %v534_v16, %v533_v11  ;;  %v542_v25 = vadd.f32 %v541_v21, %v540_v22  ;;  %v2191_v27 = vpop.f32.mrf.mxu0  ;;  %v528_v29 = vadd.f32 %v527_v15, %v526_v9 }
 0x18c   :  { %v550_v48 = vsel %vm503_vm3, %v2191_v27, 0.0 }
 0x18d   :  { %v577_v38 = vmul.f32 0.0625, %v521_v20  ;;  %v536_v30 = vrot.slane %v535_v24, 2  ;;  %v543_v31 = vrot.slane %v542_v25, 4  ;;  %v2193_v32 = vpop.f32.mrf.mxu0  ;;  %v529_v33 = vrot.slane %v528_v29, 1 }
 0x18e   :  { %v549_v39 = vsel %vm503_vm3, %v2193_v32, 0.0 }
 0x18f   :  { %594 = vrot.lane.b32.xlu1 %v577_v38, %s1935_s4  ;;  %v544_v40 = vadd.f32 %v543_v31, %v542_v25  ;;  %v551_v41 = vadd.f32 %v550_v48, %v549_v39  ;;  %v2200_v43 = vpop.f32.mrf.mxu0  ;;  %v530_v45 = vadd.f32 %v529_v33, %v528_v29  ;;  %v537_v46 = vadd.f32 %v536_v30, %v535_v24 }
 0x190   :  { %v559_v54 = vsel %vm503_vm3, %v2200_v43, 0.0 }
 0x191   :  { %v545_v47 = vrot.slane %v544_v40, 2  ;;  %v552_v49 = vrot.slane %v551_v41, 4  ;;  %v2202_v50 = vpop.f32.mrf.mxu0  ;;  %v578_v51 = vmul.f32 0.0625, %v530_v45  ;;  %v538_v53 = vrot.slane %v537_v46, 1  ;;  %v2225_v45 = vld [vmem:[%s2628_s3] ss:$0 sm:$0xff] }
 0x192   :  { %v558_v55 = vsel %vm503_vm3, %v2202_v50, 0.0  ;;  %s1713_s3 = sld [smem:[#allocation6 + $0x1]] }
 0x193   :  { %v553_v57 = vadd.f32 %v552_v49, %v551_v41  ;;  %v560_v58 = vadd.f32 %v559_v54, %v558_v55  ;;  %596 = vrot.lane.b32.xlu0 %v578_v51, %s1935_s4  ;;  %v2209_v59 = vpop.f32.mrf.mxu0  ;;  %v539_v60 = vadd.f32 %v538_v53, %v537_v46  ;;  %v546_v37 = vadd.f32 %v545_v47, %v544_v40 }
 0x194   :  { %v568_v4 = vsel %vm503_vm3, %v2209_v59, 0.0 }
 0x195   :  { %v554_v62 = vrot.slane %v553_v57, 2  ;;  %v561_v63 = vrot.slane %v560_v58, 4  ;;  %v2211_v0 = vpop.f32.mrf.mxu0  ;;  %v579_v2 = vmul.f32 0.0625, %v539_v60  ;;  %v547_v3 = vrot.slane %v546_v37, 1 }
 0x196   :  { %v567_v7 = vsel %vm503_vm3, %v2211_v0, 0.0 }
 0x197   :  { %v562_v9 = vadd.f32 %v561_v63, %v560_v58  ;;  %v569_v11 = vadd.f32 %v568_v4, %v567_v7  ;;  %598 = vrot.lane.b32.xlu1 %v579_v2, %s1935_s4  ;;  %v548_v13 = vadd.f32 %v547_v3, %v546_v37  ;;  %v555_v14 = vadd.f32 %v554_v62, %v553_v57 }
 0x199   :  { %v563_v15 = vrot.slane %v562_v9, 2  ;;  %v570_v16 = vrot.slane %v569_v11, 4  ;;  %v580_v20 = vmul.f32 0.0625, %v548_v13  ;;  %v556_v21 = vrot.slane %v555_v14, 1 }
 0x19b   :  { %v571_v22 = vadd.f32 %v570_v16, %v569_v11  ;;  %600 = vrot.lane.b32.xlu0 %v580_v20, %s1935_s4  ;;  %v557_v24 = vadd.f32 %v556_v21, %v555_v14  ;;  %v564_v25 = vadd.f32 %v563_v15, %v562_v9 }
 0x19d   :  { %v572_v38 = vrot.slane %v571_v22, 2  ;;  %v581_v29 = vmul.f32 0.0625, %v557_v24  ;;  %v565_v30 = vrot.slane %v564_v25, 1 }
 0x19f   :  { %v573_v31 = vadd.f32 %v572_v38, %v571_v22  ;;  %602 = vrot.lane.b32.xlu1 %v581_v29, %s1935_s4  ;;  %v566_v33 = vadd.f32 %v565_v30, %v564_v25 }
 0x1a1   :  { %v582_v48 = vmul.f32 0.0625, %v566_v33  ;;  %v574_v39 = vrot.slane %v573_v31, 1 }
 0x1a3   :  { %604 = vrot.lane.b32.xlu0 %v582_v48, %s1935_s4  ;;  %v575_v40 = vadd.f32 %v574_v39, %v573_v31 }
 0x1a5   :  { %v583_v41 = vmul.f32 0.0625, %v575_v40 }
 0x1a7   :  { %606 = vrot.lane.b32.xlu1 %v583_v41, %s1935_s4 }
 0x1fd   :  { %v593_v46 = vpop.permute.xlu0 %592 }
 0x1fe   :  { %v616_v47 = vadd.f32 %v593_v46, %v2143_v36  ;;  %v617_v49 = vadd.f32 %v2141_v34, %v593_v46 }
 0x200   :  { %v640_v51 = vadd.f32 %v2225_v45, %v617_v49  ;;  %v639_v53 = vadd.f32 %v2225_v45, %v616_v47 }
 0x201   :  { %v595_v54 = vpop.permute.xlu1 %594 }
 0x202   :  { %v656_v55 = vmax.f32 %v640_v51, 0.0  ;;  %v618_v57 = vadd.f32 %v595_v54, %v2151_v44  ;;  %v619_v58 = vadd.f32 %v2149_v42, %v595_v54  ;;  %v655_v60 = vmax.f32 %v639_v53, 0.0 }
 0x203   :  { %v1936_v54 = vmov 1  }
 0x204   :  { %v641_v37 = vadd.f32 %v2225_v45, %v618_v57  ;;  %v642_v62 = vadd.f32 %v2225_v45, %v619_v58  ;;  %1806 = vmatprep.mubr.msk.f32.mxu1 %vm305_vm2, %v655_v60  ;;  %1837 = vset.pattern.permute.xlu0 %v1936_v54 }
 0x205   :  { %1807 = vmatmul.mubr.msk.f32.vlgmr.msra.gmra.mxu1 %vm305_vm2, %v656_v55  ;;  %v597_v63 = vpop.permute.xlu0 %596  ;;  %1838 = vset.pattern.permute.xlu1 %v1936_v54 }
 0x206   :  { %v657_v34 = vmax.f32 %v641_v37, 0.0  ;;  %v658_v36 = vmax.f32 %v642_v62, 0.0  ;;  %v620_v2 = vadd.f32 %v597_v63, %v2165_v56  ;;  %v621_v3 = vadd.f32 %v2157_v52, %v597_v63 }
 0x208   :  { %1809 = vmatprep.mubr.msk.f32.mxu1 %vm305_vm2, %v657_v34  ;;  %v643_v42 = vadd.f32 %v2225_v45, %v620_v2  ;;  %v644_v44 = vadd.f32 %v2225_v45, %v621_v3 }
 0x209   :  { %1810 = vmatmul.mubr.msk.f32.gmra.mxu1 %vm305_vm2, %v658_v36  ;;  %v599_v4 = vpop.permute.xlu1 %598 }
 0x20a   :  { %v659_v7 = vmax.f32 %v643_v42, 0.0  ;;  %v660_v9 = vmax.f32 %v644_v44, 0.0  ;;  %v622_v11 = vadd.f32 %v599_v4, %v2176_v1  ;;  %v623_v13 = vadd.f32 %v2171_v61, %v599_v4 }
 0x20c   :  { %v645_v14 = vadd.f32 %v2225_v45, %v622_v11  ;;  %v646_v56 = vadd.f32 %v2225_v45, %v623_v13  ;;  %1812 = vmatprep.mubr.msk.f32.mxu1 %vm305_vm2, %v659_v7 }
 0x20d   :  { %1813 = vmatmul.mubr.msk.f32.gmra.mxu1 %vm305_vm2, %v660_v9  ;;  %v601_v52 = vpop.permute.xlu0 %600 }
 0x20e   :  { %v661_v15 = vmax.f32 %v645_v14, 0.0  ;;  %v662_v16 = vmax.f32 %v646_v56, 0.0  ;;  %v624_v20 = vadd.f32 %v601_v52, %v2184_v19  ;;  %v625_v21 = vadd.f32 %v2182_v35, %v601_v52 }
 0x210   :  { %v647_v22 = vadd.f32 %v2225_v45, %v624_v20  ;;  %v648_v1 = vadd.f32 %v2225_v45, %v625_v21  ;;  %1815 = vmatprep.mubr.msk.f32.mxu1 %vm305_vm2, %v661_v15 }
 0x211   :  { %v603_v61 = vpop.permute.xlu1 %602  ;;  %1816 = vmatmul.mubr.msk.f32.gmra.mxu1 %vm305_vm2, %v662_v16 }
 0x212   :  { %v663_v24 = vmax.f32 %v647_v22, 0.0  ;;  %v664_v25 = vmax.f32 %v648_v1, 0.0  ;;  %v626_v38 = vadd.f32 %v603_v61, %v2193_v32  ;;  %v627_v29 = vadd.f32 %v2191_v27, %v603_v61 }
 0x214   :  { %v649_v30 = vadd.f32 %v2225_v45, %v626_v38  ;;  %v650_v19 = vadd.f32 %v2225_v45, %v627_v29  ;;  %1818 = vmatprep.mubr.msk.f32.mxu1 %vm305_vm2, %v663_v24 }
 0x215   :  { %1819 = vmatmul.mubr.msk.f32.gmra.mxu1 %vm305_vm2, %v664_v25  ;;  %v605_v35 = vpop.permute.xlu0 %604 }
 0x216   :  { %v665_v31 = vmax.f32 %v649_v30, 0.0  ;;  %v666_v33 = vmax.f32 %v650_v19, 0.0  ;;  %v628_v48 = vadd.f32 %v605_v35, %v2202_v50  ;;  %v629_v39 = vadd.f32 %v2200_v43, %v605_v35 }
 0x218   :  { %v651_v40 = vadd.f32 %v2225_v45, %v628_v48  ;;  %v652_v32 = vadd.f32 %v2225_v45, %v629_v39  ;;  %1821 = vmatprep.mubr.msk.f32.mxu1 %vm305_vm2, %v665_v31  ;;  %v2311_v31 = vstv %s1713_s3 }
 0x219   :  { %v607_v27 = vpop.permute.xlu1 %606  ;;  %1822 = vmatmul.mubr.msk.f32.gmra.mxu1 %vm305_vm2, %v666_v33 }
 0x21a   :  { %v667_v41 = vmax.f32 %v651_v40, 0.0  ;;  %v668_v46 = vmax.f32 %v652_v32, 0.0  ;;  %v630_v47 = vadd.f32 %v607_v27, %v2211_v0  ;;  %v631_v49 = vadd.f32 %v2209_v59, %v607_v27 }
 0x21c   :  { %v653_v51 = vadd.f32 %v2225_v45, %v630_v47  ;;  %v654_v50 = vadd.f32 %v2225_v45, %v631_v49  ;;  %1824 = vmatprep.mubr.msk.f32.mxu1 %vm305_vm2, %v667_v41 }
 0x21d   :  { %1825 = vmatmul.mubr.msk.f32.gmra.mxu1 %vm305_vm2, %v668_v46 }
 0x21e   :  { %v669_v43 = vmax.f32 %v653_v51, 0.0  ;;  %v670_v53 = vmax.f32 %v654_v50, 0.0 }
 0x220   :  { %1827 = vmatprep.mubr.msk.f32.mxu1 %vm305_vm2, %v669_v43 }
 0x221   :  { %1828 = vmatmul.mubr.msk.f32.gmra.mxu1 %vm305_vm2, %v670_v53 }
 0x2c5   :  { %v2275_v0 = vpop.f32.mrf.mxu1 }
 0x2c6   :  { %v875_v45 = vsel %vm873_vm4, %v2275_v0, 0.0 }
 0x2c7   :  { %v2277_v59 = vpop.f32.mrf.mxu1 }
 0x2c8   :  { %v874_v55 = vsel %vm873_vm4, %v2277_v59, 0.0 }
 0x2c9   :  { %v876_v57 = vadd.f32 %v875_v45, %v874_v55  ;;  %v2283_v58 = vpop.f32.mrf.mxu1 }
 0x2ca   :  { %v884_v62 = vsel %vm873_vm4, %v2283_v58, 0.0 }
 0x2cb   :  { %v877_v60 = vrot.slane %v876_v57, 4  ;;  %v2285_v37 = vpop.f32.mrf.mxu1 }
 0x2cc   :  { %v883_v34 = vsel %vm873_vm4, %v2285_v37, 0.0 }
 0x2cd   :  { %v878_v36 = vadd.f32 %v877_v60, %v876_v57  ;;  %v885_v63 = vadd.f32 %v884_v62, %v883_v34  ;;  %v2291_v42 = vpop.f32.mrf.mxu1 }
 0x2ce   :  { %v893_v9 = vsel %vm873_vm4, %v2291_v42, 0.0 }
 0x2cf   :  { %v879_v2 = vrot.slane %v878_v36, 2  ;;  %v886_v3 = vrot.slane %v885_v63, 4  ;;  %v2293_v4 = vpop.f32.mrf.mxu1 }
 0x2d0   :  { %v892_v11 = vsel %vm873_vm4, %v2293_v4, 0.0 }
 0x2d1   :  { %v887_v44 = vadd.f32 %v886_v3, %v885_v63  ;;  %v880_v7 = vadd.f32 %v879_v2, %v878_v36  ;;  %v894_v14 = vadd.f32 %v893_v9, %v892_v11  ;;  %v2299_v56 = vpop.f32.mrf.mxu1 }
 0x2d2   :  { %v902_v22 = vsel %vm873_vm4, %v2299_v56, 0.0 }
 0x2d3   :  { %v888_v13 = vrot.slane %v887_v44, 2  ;;  %v881_v52 = vrot.slane %v880_v7, 1  ;;  %v895_v15 = vrot.slane %v894_v14, 4  ;;  %v2301_v16 = vpop.f32.mrf.mxu1 }
 0x2d4   :  { %v901_v1 = vsel %vm873_vm4, %v2301_v16, 0.0 }
 0x2d5   :  { %v882_v20 = vadd.f32 %v881_v52, %v880_v7  ;;  %v889_v21 = vadd.f32 %v888_v13, %v887_v44  ;;  %v896_v61 = vadd.f32 %v895_v15, %v894_v14  ;;  %v903_v24 = vadd.f32 %v902_v22, %v901_v1  ;;  %v2307_v25 = vpop.f32.mrf.mxu1 }
 0x2d6   :  { %v911_v48 = vsel %vm873_vm4, %v2307_v25, 0.0 }
 0x2d7   :  { %v946_v38 = vmul.f32 0.0625, %v882_v20  ;;  %v890_v29 = vrot.slane %v889_v21, 1  ;;  %v897_v30 = vrot.slane %v896_v61, 2  ;;  %v904_v19 = vrot.slane %v903_v24, 4  ;;  %v2309_v35 = vpop.f32.mrf.mxu1 }
 0x2d8   :  { %v910_v39 = vsel %vm873_vm4, %v2309_v35, 0.0 }
 0x2d9   :  { %958 = vperm.xlu0 %1837, %v946_v38   ;;  %v891_v33 = vadd.f32 %v890_v29, %v889_v21  ;;  %v905_v40 = vadd.f32 %v904_v19, %v903_v24  ;;  %v912_v32 = vadd.f32 %v911_v48, %v910_v39  ;;  %v2317_v27 = vpop.f32.mrf.mxu1  ;;  %v898_v46 = vadd.f32 %v897_v30, %v896_v61 }
 0x2da   :  { %v1485_v47 = vadd.f32 %v2311_v31, %v946_v38  ;;  %v920_v54 = vsel %vm873_vm4, %v2317_v27, 0.0 }
 0x2db   :  { %v947_v41 = vmul.f32 0.0625, %v891_v33  ;;  %v906_v49 = vrot.slane %v905_v40, 2  ;;  %v913_v51 = vrot.slane %v912_v32, 4  ;;  %v2320_v50 = vpop.f32.mrf.mxu1  ;;  %v899_v53 = vrot.slane %v898_v46, 1 }
 0x2dc   :  { %v919_v45 = vsel %vm873_vm4, %v2320_v50, 0.0 }
 0x2dd   :  { %963 = vperm.xlu1 %1838, %v947_v41   ;;  %v1486_v43 = vadd.f32 %v2311_v31, %v947_v41  ;;  %v914_v55 = vadd.f32 %v913_v51, %v912_v32  ;;  %v921_v57 = vadd.f32 %v920_v54, %v919_v45  ;;  %v2328_v62 = vpop.f32.mrf.mxu1  ;;  %v900_v34 = vadd.f32 %v899_v53, %v898_v46 }
 0x2de   :  { %v907_v36 = vadd.f32 %v906_v49, %v905_v40  ;;  %v929_v7 = vsel %vm873_vm4, %v2328_v62, 0.0 }
 0x2df   :  { %v1646_v60 = vsel %vm1169_vm5, %v1486_v43, %v1485_v47  ;;  %v915_v63 = vrot.slane %v914_v55, 2  ;;  %v922_v2 = vrot.slane %v921_v57, 4  ;;  %v2330_v3 = vpop.f32.mrf.mxu1  ;;  %v948_v44 = vmul.f32 0.0625, %v900_v34 }
 0x2e0   :  { %v928_v9 = vsel %vm873_vm4, %v2330_v3, 0.0  ;;  %v908_v11 = vrot.slane %v907_v36, 1 }
 0x2e1   :  { %v923_v13 = vadd.f32 %v922_v2, %v921_v57  ;;  %v930_v14 = vadd.f32 %v929_v7, %v928_v9  ;;  %968 = vperm.xlu1 %1838, %v948_v44   ;;  %v1487_v52 = vadd.f32 %v2311_v31, %v948_v44  ;;  %v2337_v15 = vpop.f32.mrf.mxu1  ;;  %v916_v20 = vadd.f32 %v915_v63, %v914_v55 }
 0x2e2   :  { %v909_v21 = vadd.f32 %v908_v11, %v907_v36  ;;  %v938_v29 = vsel %vm873_vm4, %v2337_v15, 0.0 }
 0x2e3   :  { %v924_v22 = vrot.slane %v923_v13, 2  ;;  %v931_v1 = vrot.slane %v930_v14, 4  ;;  %v1647_v61 = vsel %vm1171_vm6, %v1487_v52, %v1646_v60  ;;  %v2340_v24 = vpop.f32.mrf.mxu1  ;;  %v917_v38 = vrot.slane %v916_v20, 1 }
 0x2e4   :  { %v937_v30 = vsel %vm873_vm4, %v2340_v24, 0.0  ;;  %v949_v19 = vmul.f32 0.0625, %v909_v21  ;;  %v1937_v21 = vmov 0  }
 0x2e5   :  { %v932_v33 = vadd.f32 %v931_v1, %v930_v14  ;;  %v939_v48 = vadd.f32 %v938_v29, %v937_v30  ;;  %v918_v39 = vadd.f32 %v917_v38, %v916_v20  ;;  %v925_v40 = vadd.f32 %v924_v22, %v923_v13 }
 0x2e6   :  { %973 = vperm.xlu0 %1837, %v949_v19   ;;  %v1488_v32 = vadd.f32 %v2311_v31, %v949_v19  ;;  %v1012_v1 = vstv %s954_s10 }
 0x2e7   :  { %v933_v41 = vrot.slane %v932_v33, 2  ;;  %v940_v46 = vrot.slane %v939_v48, 4  ;;  %v950_v47 = vmul.f32 0.0625, %v918_v39  ;;  %v926_v49 = vrot.slane %v925_v40, 1 }
 0x2e8   :  { %v1648_v51 = vsel %vm1173_vm7, %v1488_v32, %v1647_v61 }
 0x2e9   :  { %v941_v43 = vadd.f32 %v940_v46, %v939_v48  ;;  %978 = vperm.xlu1 %1838, %v950_v47   ;;  %v1489_v53 = vadd.f32 %v2311_v31, %v950_v47  ;;  %v927_v54 = vadd.f32 %v926_v49, %v925_v40  ;;  %v934_v45 = vadd.f32 %v933_v41, %v932_v33 }
 0x2eb   :  { %v942_v55 = vrot.slane %v941_v43, 2  ;;  %v951_v57 = vmul.f32 0.0625, %v927_v54  ;;  %v935_v60 = vrot.slane %v934_v45, 1  ;;  %v1649_v34 = vsel %vm1175_vm8, %v1489_v53, %v1648_v51 }
 0x2ed   :  { %v943_v36 = vadd.f32 %v942_v55, %v941_v43  ;;  %983 = vperm.xlu0 %1837, %v951_v57   ;;  %v1490_v63 = vadd.f32 %v2311_v31, %v951_v57  ;;  %v936_v2 = vadd.f32 %v935_v60, %v934_v45 }
 0x2ef   :  { %v952_v44 = vmul.f32 0.0625, %v936_v2  ;;  %v944_v7 = vrot.slane %v943_v36, 1  ;;  %v1650_v9 = vsel %vm1177_vm9, %v1490_v63, %v1649_v34 }
 0x2f1   :  { %988 = vperm.xlu1 %1838, %v952_v44   ;;  %v1491_v11 = vadd.f32 %v2311_v31, %v952_v44  ;;  %v945_v13 = vadd.f32 %v944_v7, %v943_v36 }
 0x2f3   :  { %v953_v14 = vmul.f32 0.0625, %v945_v13  ;;  %v1651_v52 = vsel %vm1179_vm10, %v1491_v11, %v1650_v9 }
 0x2f5   :  { %993 = vperm.xlu0 %1837, %v953_v14   ;;  %v1492_v20 = vadd.f32 %v2311_v31, %v953_v14  ;;  %1839 = vset.pattern.permute.xlu1 %v1937_v21 }
 0x2f7   :  { %v2356_v22 = vsel %vm1181_vm11, %v1492_v20, %v1651_v52 }
 0x2f9   :  { %1840 = vset.pattern.permute.xlu0 %v1937_v21 }
 0x354   :  { %v959_v61 = vpop.permute.xlu0 %958 }
 0x355   :  { %v996_v38 = vadd.f32 %v959_v61, %v2277_v59  ;;  %v997_v29 = vadd.f32 %v2275_v0, %v959_v61 }
 0x357   :  { %v2360_v30 = vadd.f32 %v1012_v1, %v996_v38  ;;  %v2362_v19 = vadd.f32 %v1012_v1, %v997_v29 }
 0x358   :  { %v964_v33 = vpop.permute.xlu1 %963 }
 0x359   :  { %v998_v31 = vadd.f32 %v964_v33, %v2285_v37  ;;  %1049 = vperm.xlu0 %1840, %v2362_v19   ;;  %1046 = vperm.xlu1 %1839, %v2360_v30   ;;  %v999_v48 = vadd.f32 %v2283_v58, %v964_v33 }
 0x35b   :  { %v2368_v39 = vadd.f32 %v1012_v1, %v998_v31  ;;  %v2371_v40 = vadd.f32 %v1012_v1, %v999_v48 }
 0x35c   :  { %v969_v59 = vpop.permute.xlu1 %968 }
 0x35d   :  { %1052 = vperm.xlu1 %1839, %v2368_v39   ;;  %v1000_v0 = vadd.f32 %v969_v59, %v2293_v4  ;;  %v1001_v32 = vadd.f32 %v2291_v42, %v969_v59 }
 0x35f   :  { %v2375_v41 = vadd.f32 %v1012_v1, %v1000_v0  ;;  %v2378_v37 = vadd.f32 %v1012_v1, %v1001_v32 }
 0x361   :  { %1055 = vperm.xlu1 %1839, %v2371_v40   ;;  %v974_v46 = vpop.permute.xlu0 %973  ;;  %1058 = vperm.xlu0 %1840, %v2375_v41  }
 0x362   :  { %v1002_v58 = vadd.f32 %v974_v46, %v2301_v16  ;;  %v1003_v47 = vadd.f32 %v2299_v56, %v974_v46 }
 0x364   :  { %v2384_v49 = vadd.f32 %v1012_v1, %v1002_v58  ;;  %v979_v4 = vpop.permute.xlu1 %978  ;;  %v2386_v51 = vadd.f32 %v1012_v1, %v1003_v47 }
 0x365   :  { %1061 = vperm.xlu1 %1839, %v2378_v37   ;;  %v1004_v42 = vadd.f32 %v979_v4, %v2309_v35  ;;  %v1005_v43 = vadd.f32 %v2307_v25, %v979_v4 }
 0x366   :  { %1064 = vperm.xlu0 %1840, %v2384_v49  }
 0x367   :  { %v2391_v53 = vadd.f32 %v1012_v1, %v1004_v42  ;;  %v2394_v54 = vadd.f32 %v1012_v1, %v1005_v43 }
 0x368   :  { %v984_v16 = vpop.permute.xlu0 %983 }
 0x369   :  { %1067 = vperm.xlu1 %1839, %v2386_v51   ;;  %v1006_v56 = vadd.f32 %v984_v16, %v2320_v50  ;;  %v1007_v45 = vadd.f32 %v2317_v27, %v984_v16 }
 0x36a   :  { %1070 = vperm.xlu0 %1840, %v2391_v53  }
 0x36b   :  { %v2399_v55 = vadd.f32 %v1012_v1, %v1006_v56  ;;  %v2402_v35 = vadd.f32 %v1012_v1, %v1007_v45 }
 0x36c   :  { %v989_v25 = vpop.permute.xlu1 %988 }
 0x36d   :  { %1073 = vperm.xlu1 %1839, %v2394_v54   ;;  %v1008_v57 = vadd.f32 %v989_v25, %v2330_v3  ;;  %v1009_v60 = vadd.f32 %v2328_v62, %v989_v25 }
 0x36e   :  { %1076 = vperm.xlu0 %1840, %v2399_v55  }
 0x36f   :  { %v2407_v34 = vadd.f32 %v1012_v1, %v1008_v57  ;;  %v2410_v50 = vadd.f32 %v1012_v1, %v1009_v60 }
 0x370   :  { %v994_v27 = vpop.permute.xlu0 %993 }
 0x371   :  { %1079 = vperm.xlu1 %1839, %v2402_v35   ;;  %v1010_v36 = vadd.f32 %v994_v27, %v2340_v24  ;;  %v1011_v63 = vadd.f32 %v2337_v15, %v994_v27 }
 0x372   :  { %1082 = vperm.xlu0 %1840, %v2407_v34  }
 0x373   :  { %v2415_v2 = vadd.f32 %v1012_v1, %v1010_v36  ;;  %v2418_v62 = vadd.f32 %v1012_v1, %v1011_v63 }
 0x375   :  { %1085 = vperm.xlu1 %1839, %v2410_v50  }
 0x376   :  { %1088 = vperm.xlu0 %1840, %v2415_v2  }
 0x379   :  { %1091 = vperm.xlu1 %1839, %v2418_v62  }
 0x3d4   :  { %v1047_v3 = vpop.permute.xlu1 %1046  ;;  %v1050_v7 = vpop.permute.xlu0 %1049 }
 0x3d5   :  { %v1098_v38 = vrot.slane %v1047_v3, %v1989_v6  ;;  %v1103_v29 = vrot.slane %v1050_v7, %v1994_v10 }
 0x3d7   :  { %v1105_v43 = vsel %vm1104_vm12, %v1103_v29, %v1098_v38 }
 0x3d8   :  { %v1053_v44 = vpop.permute.xlu1 %1052 }
 0x3d9   :  { %v1109_v33 = vrot.slane %v1053_v44, %v1989_v6 }
 0x3dc   :  { %v1056_v9 = vpop.permute.xlu1 %1055  ;;  %v1059_v11 = vpop.permute.xlu0 %1058 }
 0x3dd   :  { %v1113_v20 = vrot.slane %v1056_v9, %v1994_v10  ;;  %v1118_v48 = vrot.slane %v1059_v11, %v1989_v6 }
 0x3df   :  { %v1114_v0 = vsel %vm1104_vm12, %v1113_v20, %v1109_v33 }
 0x3e0   :  { %v1062_v24 = vpop.permute.xlu1 %1061  ;;  %v1170_v25 = vsel %vm1169_vm5, %v1114_v0, %v1105_v43 }
 0x3e1   :  { %v1065_v13 = vpop.permute.xlu0 %1064  ;;  %v1122_v1 = vrot.slane %v1062_v24, %v1994_v10 }
 0x3e2   :  { %v1127_v32 = vrot.slane %v1065_v13, %v1989_v6 }
 0x3e3   :  { %v1123_v47 = vsel %vm1104_vm12, %v1122_v1, %v1118_v48 }
 0x3e4   :  { %v1068_v15 = vpop.permute.xlu1 %1067  ;;  %v1172_v27 = vsel %vm1171_vm6, %v1123_v47, %v1170_v25 }
 0x3e5   :  { %v1071_v14 = vpop.permute.xlu0 %1070  ;;  %v1131_v31 = vrot.slane %v1068_v15, %v1994_v10 }
 0x3e6   :  { %v1136_v4 = vrot.slane %v1071_v14, %v1989_v6 }
 0x3e7   :  { %v1132_v16 = vsel %vm1104_vm12, %v1131_v31, %v1127_v32 }
 0x3e8   :  { %v1074_v52 = vpop.permute.xlu1 %1073  ;;  %v1174_v3 = vsel %vm1173_vm7, %v1132_v16, %v1172_v27 }
 0x3e9   :  { %v1077_v21 = vpop.permute.xlu0 %1076  ;;  %v1140_v59 = vrot.slane %v1074_v52, %v1994_v10 }
 0x3ea   :  { %v1145_v56 = vrot.slane %v1077_v21, %v1989_v6 }
 0x3eb   :  { %v1141_v57 = vsel %vm1104_vm12, %v1140_v59, %v1136_v4 }
 0x3ec   :  { %v1080_v61 = vpop.permute.xlu1 %1079  ;;  %v1176_v9 = vsel %vm1175_vm8, %v1141_v57, %v1174_v3 }
 0x3ed   :  { %v1149_v46 = vrot.slane %v1080_v61, %v1994_v10  ;;  %v1083_v58 = vpop.permute.xlu0 %1082 }
 0x3ee   :  { %v1154_v60 = vrot.slane %v1083_v58, %v1989_v6 }
 0x3ef   :  { %v1150_v36 = vsel %vm1104_vm12, %v1149_v46, %v1145_v56 }
 0x3f0   :  { %v1086_v42 = vpop.permute.xlu1 %1085  ;;  %v1178_v13 = vsel %vm1177_vm9, %v1150_v36, %v1176_v9 }
 0x3f1   :  { %v1158_v45 = vrot.slane %v1086_v42, %v1994_v10  ;;  %v1089_v63 = vpop.permute.xlu0 %1088 }
 0x3f2   :  { %v1163_v11 = vrot.slane %v1089_v63, %v1989_v6 }
 0x3f3   :  { %v1159_v44 = vsel %vm1104_vm12, %v1158_v45, %v1154_v60 }
 0x3f4   :  { %v1092_v7 = vpop.permute.xlu1 %1091  ;;  %v1180_v14 = vsel %vm1179_vm10, %v1159_v44, %v1178_v13 }
 0x3f5   :  { %v1167_v24 = vrot.slane %v1092_v7, %v1994_v10 }
 0x3f7   :  { %v1168_v15 = vsel %vm1104_vm12, %v1167_v24, %v1163_v11 }
 0x3f8   :  { %v1182_v52 = vsel %vm1181_vm11, %v1168_v15, %v1180_v14 }
 0x3f9   :  { %v1184_v20 = vsel %vm53_vm0, %v1182_v52, -inf }
 0x3fa   :  { %1185 = vmax.xlane.f32.xlu0 %v1184_v20 }
 0x483   :  { %v1186_v21 = vpop.xlane.xlu0 %1185 }
 0x484   :  { %v1191_v1 = vrot.slane %v1186_v21, %v1987_v5  ;;  %v1195_v38 = vrot.slane %v1186_v21, %v1991_v8  ;;  %v1207_v29 = vrot.slane %v1186_v21, %v2013_v18  ;;  %v2462_v32 = vrot.slane %v1186_v21, %v2032_v28 }
 0x485   :  { %v1199_v58 = vrot.slane %v1186_v21, %v1997_v12  ;;  %v1203_v42 = vrot.slane %v1186_v21, %v2011_v17 }
 0x486   :  { %v1228_v61 = vsub.f32 %v2360_v30, %v1191_v1  ;;  %v1229_v33 = vsub.f32 %v2362_v19, %v1191_v1  ;;  %v1230_v48 = vsub.f32 %v2368_v39, %v1195_v38  ;;  %v1236_v59 = vsub.f32 %v2391_v53, %v1207_v29 }
 0x487   :  { %v1231_v30 = vsub.f32 %v2371_v40, %v1195_v38  ;;  %v1242_v19 = vsub.f32 %v2415_v2, %v2462_v32  ;;  %v1232_v39 = vsub.f32 %v2375_v41, %v1199_v58  ;;  %v1233_v43 = vsub.f32 %v2378_v37, %v1199_v58 }
 0x488   :  { %v1244_v31 = vmul.f32 1.442695, %v1228_v61  ;;  %v1246_v0 = vmul.f32 1.442695, %v1229_v33  ;;  %v1248_v46 = vmul.f32 1.442695, %v1230_v48  ;;  %v1234_v40 = vsub.f32 %v2384_v49, %v1203_v42 }
 0x489   :  { %v1260_v47 = vmul.f32 1.442695, %v1236_v59  ;;  %v1250_v4 = vmul.f32 1.442695, %v1231_v30  ;;  %v1272_v53 = vmul.f32 1.442695, %v1242_v19  ;;  %v1235_v25 = vsub.f32 %v2386_v51, %v1203_v42 }
 0x48a   :  { %1841 = vpow2.f32 %v1244_v31  ;;  %v1252_v16 = vmul.f32 1.442695, %v1232_v39  ;;  %v1254_v2 = vmul.f32 1.442695, %v1233_v43  ;;  %v1256_v37 = vmul.f32 1.442695, %v1234_v40 }
 0x48b   :  { %1843 = vpow2.f32 %v1246_v0  ;;  %v1211_v49 = vrot.slane %v1186_v21, %v2023_v23  ;;  %v1237_v60 = vsub.f32 %v2394_v54, %v1207_v29  ;;  %v1258_v27 = vmul.f32 1.442695, %v1235_v25 }
 0x48c   :  { %1845 = vpow2.f32 %v1248_v46  ;;  %v1215_v54 = vrot.slane %v1186_v21, %v2029_v26 }
 0x48d   :  { %1847 = vpow2.f32 %v1260_v47  ;;  %v1238_v51 = vsub.f32 %v2399_v55, %v1211_v49  ;;  %v1262_v3 = vmul.f32 1.442695, %v1237_v60  ;;  %v1239_v7 = vsub.f32 %v2402_v35, %v1211_v49 }
 0x48e   :  { %1849 = vpow2.f32 %v1250_v4  ;;  %v1240_v55 = vsub.f32 %v2407_v34, %v1215_v54  ;;  %v1241_v15 = vsub.f32 %v2410_v50, %v1215_v54  ;;  %v1243_v35 = vsub.f32 %v2418_v62, %v2462_v32 }
 0x48f   :  { %1851 = vpow2.f32 %v1272_v53  ;;  %v1264_v9 = vmul.f32 1.442695, %v1238_v51  ;;  %v1266_v24 = vmul.f32 1.442695, %v1239_v7 }
 0x490   :  { %1853 = vpow2.f32 %v1252_v16  ;;  %v1268_v14 = vmul.f32 1.442695, %v1240_v55  ;;  %v1270_v20 = vmul.f32 1.442695, %v1241_v15  ;;  %v1274_v21 = vmul.f32 1.442695, %v1243_v35 }
 0x491   :  { %1855 = vpow2.f32 %v1254_v2 }
 0x492   :  { %1857 = vpow2.f32 %v1256_v37 }
 0x493   :  { %1859 = vpow2.f32 %v1258_v27 }
 0x494   :  { %1861 = vpow2.f32 %v1262_v3 }
 0x495   :  { %1863 = vpow2.f32 %v1264_v9 }
 0x496   :  { %1865 = vpow2.f32 %v1266_v24 }
 0x497   :  { %v2471_v56 = vpop.eup %1841  ;;  %1867 = vpow2.f32 %v1268_v14 }
 0x498   :  { %1293 = vperm.xlu1 %1839, %v2471_v56   ;;  %v2475_v45 = vpop.eup %1843  ;;  %1869 = vpow2.f32 %v1270_v20 }
 0x499   :  { %v2478_v41 = vpop.eup %1845  ;;  %1871 = vpow2.f32 %v1274_v21 }
 0x49a   :  { %v2481_v57 = vpop.eup %1847 }
 0x49b   :  { %1317 = vperm.xlu0 %1840, %v2481_v57   ;;  %v2487_v36 = vpop.eup %1849 }
 0x49c   :  { %1296 = vperm.xlu1 %1839, %v2475_v45   ;;  %v2490_v63 = vpop.eup %1851 }
 0x49d   :  { %v2494_v44 = vpop.eup %1853 }
 0x49e   :  { %v2499_v11 = vpop.eup %1855 }
 0x49f   :  { %1335 = vperm.xlu0 %1840, %v2490_v63   ;;  %v2503_v13 = vpop.eup %1857 }
 0x4a0   :  { %1299 = vperm.xlu1 %1839, %v2478_v41   ;;  %v2507_v52 = vpop.eup %1859 }
 0x4a1   :  { %v2512_v34 = vpop.eup %1861 }
 0x4a2   :  { %v2515_v1 = vpop.eup %1863 }
 0x4a3   :  { %v2518_v50 = vpop.eup %1865 }
 0x4a4   :  { %1302 = vperm.xlu1 %1839, %v2487_v36   ;;  %v2521_v61 = vpop.eup %1867 }
 0x4a5   :  { %v2524_v62 = vpop.eup %1869 }
 0x4a6   :  { %v2527_v38 = vpop.eup %1871 }
 0x4a8   :  { %1305 = vperm.xlu1 %1839, %v2494_v44  }
 0x4ac   :  { %1308 = vperm.xlu1 %1839, %v2499_v11  }
 0x4b0   :  { %1311 = vperm.xlu1 %1839, %v2503_v13  }
 0x4b4   :  { %1314 = vperm.xlu1 %1839, %v2507_v52  }
 0x4b8   :  { %1320 = vperm.xlu1 %1839, %v2512_v34  }
 0x4bc   :  { %1323 = vperm.xlu1 %1839, %v2515_v1  }
 0x4c0   :  { %1326 = vperm.xlu1 %1839, %v2518_v50  }
 0x4c4   :  { %1329 = vperm.xlu1 %1839, %v2521_v61  }
 0x4c8   :  { %1332 = vperm.xlu1 %1839, %v2524_v62  }
 0x4cc   :  { %1338 = vperm.xlu1 %1839, %v2527_v38  }
 0x513   :  { %v1294_v29 = vpop.permute.xlu1 %1293 }
 0x514   :  { %v1343_v25 = vrot.slane %v1294_v29, %v1989_v6 }
 0x516   :  { %v1318_v39 = vpop.permute.xlu0 %1317 }
 0x517   :  { %v1297_v33 = vpop.permute.xlu1 %1296  ;;  %v1379_v27 = vrot.slane %v1318_v39, %v1989_v6 }
 0x518   :  { %v1347_v42 = vrot.slane %v1297_v33, %v1994_v10 }
 0x51a   :  { %v1348_v54 = vsel %vm1104_vm12, %v1347_v42, %v1343_v25  ;;  %v1336_v24 = vpop.permute.xlu0 %1335 }
 0x51b   :  { %v1300_v31 = vpop.permute.xlu1 %1299 }
 0x51c   :  { %v1352_v43 = vrot.slane %v1300_v31, %v1989_v6 }
 0x51f   :  { %v1303_v48 = vpop.permute.xlu1 %1302 }
 0x520   :  { %v1356_v19 = vrot.slane %v1303_v48, %v1994_v10  ;;  %v1406_v48 = vrot.slane %v1336_v24, %v1989_v6 }
 0x522   :  { %v1357_v37 = vsel %vm1104_vm12, %v1356_v19, %v1352_v43 }
 0x523   :  { %v1306_v59 = vpop.permute.xlu1 %1305  ;;  %v1412_v15 = vsel %vm1169_vm5, %v1357_v37, %v1348_v54 }
 0x524   :  { %v1361_v40 = vrot.slane %v1306_v59, %v1989_v6 }
 0x527   :  { %v1309_v0 = vpop.permute.xlu1 %1308 }
 0x528   :  { %v1365_v4 = vrot.slane %v1309_v0, %v1994_v10 }
 0x52a   :  { %v1366_v51 = vsel %vm1104_vm12, %v1365_v4, %v1361_v40 }
 0x52b   :  { %v1312_v32 = vpop.permute.xlu1 %1311  ;;  %v1413_v20 = vsel %vm1171_vm6, %v1366_v51, %v1412_v15 }
 0x52c   :  { %v1370_v49 = vrot.slane %v1312_v32, %v1989_v6 }
 0x52f   :  { %v1315_v46 = vpop.permute.xlu1 %1314 }
 0x530   :  { %v1374_v16 = vrot.slane %v1315_v46, %v1994_v10 }
 0x532   :  { %v1375_v7 = vsel %vm1104_vm12, %v1374_v16, %v1370_v49 }
 0x533   :  { %v1321_v58 = vpop.permute.xlu1 %1320  ;;  %v1414_v29 = vsel %vm1173_vm7, %v1375_v7, %v1413_v20 }
 0x534   :  { %v1383_v2 = vrot.slane %v1321_v58, %v1994_v10 }
 0x536   :  { %v1384_v14 = vsel %vm1104_vm12, %v1383_v2, %v1379_v27 }
 0x537   :  { %v1324_v30 = vpop.permute.xlu1 %1323  ;;  %v1415_v59 = vsel %vm1175_vm8, %v1384_v14, %v1414_v29 }
 0x538   :  { %v1388_v9 = vrot.slane %v1324_v30, %v1989_v6 }
 0x53b   :  { %v1327_v47 = vpop.permute.xlu1 %1326 }
 0x53c   :  { %v1392_v60 = vrot.slane %v1327_v47, %v1994_v10 }
 0x53e   :  { %v1393_v21 = vsel %vm1104_vm12, %v1392_v60, %v1388_v9 }
 0x53f   :  { %v1330_v53 = vpop.permute.xlu1 %1329  ;;  %v1416_v32 = vsel %vm1177_vm9, %v1393_v21, %v1415_v59 }
 0x540   :  { %v1397_v35 = vrot.slane %v1330_v53, %v1989_v6 }
 0x543   :  { %v1333_v3 = vpop.permute.xlu1 %1332 }
 0x544   :  { %v1401_v55 = vrot.slane %v1333_v3, %v1994_v10 }
 0x546   :  { %v1402_v33 = vsel %vm1104_vm12, %v1401_v55, %v1397_v35 }
 0x547   :  { %v1339_v31 = vpop.permute.xlu1 %1338  ;;  %v1417_v58 = vsel %vm1179_vm10, %v1402_v33, %v1416_v32 }
 0x548   :  { %v1410_v0 = vrot.slane %v1339_v31, %v1994_v10 }
 0x54a   :  { %v1411_v46 = vsel %vm1104_vm12, %v1410_v0, %v1406_v48 }
 0x54b   :  { %v1418_v30 = vsel %vm1181_vm11, %v1411_v46, %v1417_v58 }
 0x54c   :  { %v1420_v47 = vsel %vm53_vm0, %v1418_v30, 0.0 }
 0x54d   :  { %1421 = vadd.xlane.f32.xlu0 %v1420_v47 }
 0x5d6   :  { %v1422_v19 = vpop.xlane.xlu0 %1421 }
 0x5d7   :  { %1873 = vrcp.f32 %v1422_v19 }
 0x5e4   :  { %v1874_v39 = vpop.eup %1873 }
 0x5e5   :  { %v1424_v4 = vmul.f32 %v1874_v39, %v1422_v19 }
 0x5e7   :  { %v1425_v53 = vsub.f32 2.0, %v1424_v4 }
 0x5e9   :  { %v1426_v42 = vmul.f32 %v1874_v39, %v1425_v53 }
 0x5eb   :  { %v1447_v43 = vrot.slane %v1426_v42, %v2013_v18  ;;  %v1431_v16 = vrot.slane %v1426_v42, %v1987_v5  ;;  %v1459_v25 = vrot.slane %v1426_v42, %v2032_v28  ;;  %v1435_v60 = vrot.slane %v1426_v42, %v1991_v8 }
 0x5ec   :  { %v1439_v28 = vrot.slane %v1426_v42, %v1997_v12  ;;  %v1443_v8 = vrot.slane %v1426_v42, %v2011_v17 }
 0x5ed   :  { %v1476_v40 = vmul.f32 %v2481_v57, %v1447_v43  ;;  %v1468_v2 = vmul.f32 %v2471_v56, %v1431_v16  ;;  %v1482_v37 = vmul.f32 %v2490_v63, %v1459_v25  ;;  %v1469_v49 = vmul.f32 %v2475_v45, %v1431_v16 }
 0x5ee   :  { %v1470_v18 = vmul.f32 %v2478_v41, %v1435_v60  ;;  %v1471_v5 = vmul.f32 %v2487_v36, %v1435_v60  ;;  %v1472_v56 = vmul.f32 %v2494_v44, %v1439_v28  ;;  %v1473_v45 = vmul.f32 %v2499_v11, %v1439_v28 }
 0x5ef   :  { %1534 = vperm.xlu0 %1840, %v1476_v40   ;;  %1510 = vperm.xlu1 %1839, %v1468_v2   ;;  %v1474_v57 = vmul.f32 %v2503_v13, %v1443_v8  ;;  %v1475_v41 = vmul.f32 %v2507_v52, %v1443_v8  ;;  %v1451_v36 = vrot.slane %v1426_v42, %v2023_v23 }
 0x5f0   :  { %v1455_v44 = vrot.slane %v1426_v42, %v2029_v26  ;;  %v1483_v13 = vmul.f32 %v2527_v38, %v1459_v25 }
 0x5f1   :  { %v1478_v12 = vmul.f32 %v2515_v1, %v1451_v36  ;;  %v1479_v63 = vmul.f32 %v2518_v50, %v1451_v36 }
 0x5f2   :  { %v1480_v17 = vmul.f32 %v2521_v61, %v1455_v44  ;;  %v1481_v11 = vmul.f32 %v2524_v62, %v1455_v44 }
 0x5f3   :  { %1552 = vperm.xlu0 %1840, %v1482_v37   ;;  %1513 = vperm.xlu1 %1839, %v1469_v49  }
 0x5f7   :  { %1653 = vrot.lane.b32.xlu0 %v2356_v22, %s1938_s11  ;;  %1516 = vperm.xlu1 %1839, %v1470_v18   ;;  %v1477_v22 = vmul.f32 %v2512_v34, %v1447_v43 }
 0x5fb   :  { %1519 = vperm.xlu1 %1839, %v1471_v5  }
 0x5ff   :  { %1522 = vperm.xlu1 %1839, %v1472_v56  }
 0x603   :  { %1525 = vperm.xlu1 %1839, %v1473_v45  }
 0x607   :  { %1528 = vperm.xlu1 %1839, %v1474_v57  }
 0x60b   :  { %1531 = vperm.xlu1 %1839, %v1475_v41  }
 0x60f   :  { %1537 = vperm.xlu1 %1839, %v1477_v22  }
 0x613   :  { %1540 = vperm.xlu1 %1839, %v1478_v12  }
 0x617   :  { %1543 = vperm.xlu1 %1839, %v1479_v63  }
 0x61b   :  { %1546 = vperm.xlu1 %1839, %v1480_v17  }
 0x61f   :  { %1549 = vperm.xlu1 %1839, %v1481_v11  }
 0x623   :  { %1555 = vperm.xlu1 %1839, %v1483_v13  }
 0x66a   :  { %v1535_v52 = vpop.permute.xlu0 %1534  ;;  %v1511_v23 = vpop.permute.xlu1 %1510 }
 0x66b   :  { %v1560_v29 = vrot.slane %v1511_v23, %v1989_v6  ;;  %v1596_v59 = vrot.slane %v1535_v52, %v1989_v6 }
 0x66e   :  { %v1553_v34 = vpop.permute.xlu0 %1552  ;;  %v1514_v27 = vpop.permute.xlu1 %1513 }
 0x66f   :  { %v1564_v15 = vrot.slane %v1514_v27, %v1994_v10  ;;  %v1623_v2 = vrot.slane %v1553_v34, %v1989_v6 }
 0x671   :  { %v1565_v46 = vsel %vm1104_vm12, %v1564_v15, %v1560_v29 }
 0x672   :  { %v1654_v1 = vpop.permute.xlu0 %1653  ;;  %v1517_v51 = vpop.permute.xlu1 %1516 }
 0x673   :  { %1657 = vst.msk [vmem:[%s2632_s7] sm:$0xff] %vm1656_vm13, %v1654_v1  ;;  %v1569_v14 = vrot.slane %v1517_v51, %v1989_v6  ;;  %s1939_s7 = smov [#allocation7]  }
 0x674   :  { %s1664_s14 = sshll.u32 %s1939_s7, 4  ;;  %s1665_s14 = int_to_ptr.vmem [resolvable:$true] %s1664_s14 }
 0x675   :  { %s1907_s15 = scalar_lea.vmem %s1665_s14, 128  ;;  %p1912_p11 = scmp.lt.s32.totalorder %s1665_s14, %s1665_s14 }
 0x676   :  { %v1520_v26 = vpop.permute.xlu1 %1519  ;;  %p1908_p10 = scmp.ne.s32.totalorder %s1665_s14, %s1907_s15  ;;  %p1913_p12 = scmp.lt.s32.totalorder %s1907_s15, %s1907_s15 }
 0x677   :  { %v1573_v9 = vrot.slane %v1520_v26, %v1994_v10 }
 0x678   :  { %p1914_p13 = por %p1913_p12, %p1912_p11 }
 0x679   :  { %v1574_v33 = vsel %vm1104_vm12, %v1573_v9, %v1569_v14 }
 0x67a   :  { %v1523_v50 = vpop.permute.xlu1 %1522  ;;  %v1629_v19 = vsel %vm1169_vm5, %v1574_v33, %v1565_v46  ;;  %p1915_p0 = pnand %p1914_p13, %p1908_p10 }
 0x67b   :  { %v1578_v20 = vrot.slane %v1523_v50, %v1989_v6 }
 0x67e   :  { %v1526_v61 = vpop.permute.xlu1 %1525 }
 0x67f   :  { %v1582_v55 = vrot.slane %v1526_v61, %v1994_v10 }
 0x681   :  { %v1583_v0 = vsel %vm1104_vm12, %v1582_v55, %v1578_v20 }
 0x682   :  { %v1529_v3 = vpop.permute.xlu1 %1528  ;;  %v1630_v53 = vsel %vm1171_vm6, %v1583_v0, %v1629_v19 }
 0x683   :  { %v1587_v31 = vrot.slane %v1529_v3, %v1989_v6 }
 0x686   :  { %v1532_v62 = vpop.permute.xlu1 %1531 }
 0x687   :  { %v1591_v35 = vrot.slane %v1532_v62, %v1994_v10 }
 0x689   :  { %v1592_v58 = vsel %vm1104_vm12, %v1591_v35, %v1587_v31 }
 0x68a   :  { %v1538_v54 = vpop.permute.xlu1 %1537  ;;  %v1631_v43 = vsel %vm1173_vm7, %v1592_v58, %v1630_v53 }
 0x68b   :  { %v1600_v21 = vrot.slane %v1538_v54, %v1994_v10 }
 0x68d   :  { %v1601_v39 = vsel %vm1104_vm12, %v1600_v21, %v1596_v59 }
 0x68e   :  { %v1541_v7 = vpop.permute.xlu1 %1540  ;;  %v1632_v25 = vsel %vm1175_vm8, %v1601_v39, %v1631_v43 }
 0x68f   :  { %v1605_v30 = vrot.slane %v1541_v7, %v1989_v6 }
 0x692   :  { %v1544_v38 = vpop.permute.xlu1 %1543 }
 0x693   :  { %v1609_v48 = vrot.slane %v1544_v38, %v1994_v10 }
 0x695   :  { %v1610_v42 = vsel %vm1104_vm12, %v1609_v48, %v1605_v30 }
 0x696   :  { %v1547_v24 = vpop.permute.xlu1 %1546  ;;  %v1633_v49 = vsel %vm1177_vm9, %v1610_v42, %v1632_v25 }
 0x697   :  { %v1614_v4 = vrot.slane %v1547_v24, %v1989_v6 }
 0x69a   :  { %v1550_v32 = vpop.permute.xlu1 %1549 }
 0x69b   :  { %v1618_v47 = vrot.slane %v1550_v32, %v1994_v10 }
 0x69d   :  { %v1619_v16 = vsel %vm1104_vm12, %v1618_v47, %v1614_v4 }
 0x69e   :  { %v1556_v40 = vpop.permute.xlu1 %1555  ;;  %v1634_v18 = vsel %vm1179_vm10, %v1619_v16, %v1633_v49 }
 0x69f   :  { %v1627_v37 = vrot.slane %v1556_v40, %v1994_v10 }
 0x6a1   :  { %v1628_v60 = vsel %vm1104_vm12, %v1627_v37, %v1623_v2 }
 0x6a2   :  { %v1635_v5 = vsel %vm1181_vm11, %v1628_v60, %v1634_v18 }
 0x6a3   :  { %1637 = vst.msk [vmem:[#allocation7] sm:$0xff] %vm53_vm0, %v1635_v5 }
 0x6a4   :  { %1918 = shalt.err (!%p1915_p0)
}
 0x6a5   :  { %1667 = dma.vmem_to_hbm [thread:$0]  %s1665_s14, 128, %s2631_s6, [#allocation4]  }
 0x6a6   :  { %1931 = dma.done.wait [#allocation4], 128  }
 0x6a7   :  { %1932 = vsyncadd [#allocation4], 4294967168 }
 0x6a8   :  { %1675 = vsyncpa [#allocation3], 1 }
 0x6a9   :  { %1676 = vsyncpa [#allocation4], 1 }
 0x6aa   :  { %1677 = vsyncpa [#allocation5], 1 }

</bundles_post_ra>
